<compile_context>
chip_gen: v6e
topology: v6e:2x2x1
jax: 0.10.0
libtpu: 0.0.40
codegen_flags: <defaults>
</compile_context>

<pallas_src>
import jax
import jax.numpy as jnp
from jax.experimental import pallas as pl
from jax.experimental.pallas import tpu as pltpu

BN_EPS = 1e-5        # python float -> inlined literal (NOT a captured jnp const)
LANE = 128
SUBLANE = 8


def _round_up(x, m):
    return ((x + m - 1) // m) * m


def _pick_row_tile(n_pad):
    # Tall M tiles keep the 256-wide MXUs (v6e/v7x) fed given the fixed
    # 128-lane output width; v5e's 128x128 MXU is fine with any of these.
    for tm in (512, 256, 128):
        if n_pad % tm == 0:
            return tm
    return 128


def _phys_bytes(shape, itemsize):
    """Approximate VMEM footprint of an array after (8, 128) tile padding."""
    s = list(shape)
    if len(s) == 1:
        s = [1] + s
    s[-1] = _round_up(s[-1], LANE)
    s[-2] = _round_up(s[-2], SUBLANE)
    n = 1
    for d in s:
        n *= int(d)
    return n * itemsize


# ---------------------------------------------------------------------------
# Fused kernel: num_layers x (GCN -> BatchNorm -> ReLU) + max-pool + FC
# ---------------------------------------------------------------------------
def _make_fused_gnn_kernel(num_layers, num_graphs, n_real, tm):
    inv_n = 1.0 / float(n_real)       # python float: inlined, not captured

    def kernel(x_ref, a_ref, w_ref, g_ref, bt_ref, mask_ref, wfc_ref, bfc_ref,
               node_ref, ge_ref, out_ref,
               h_scr, xw_scr, s1_scr, s2_scr):
        l = pl.program_id(0)          # layer            (sequential dependency)
        i = pl.program_id(1)          # node-row tile    (sequential: BN stats)
        nt = pl.num_programs(1)

        # First grid step: load the input features into the layer carry.
        @pl.when(jnp.logical_and(l == 0, i == 0))
        def _():
            h_scr[...] = x_ref[...]

        # Per-layer prologue: zero BN accumulators and compute XW = h @ W_l
        # once (resident (N, 128), reused by every row tile of this layer).
        @pl.when(i == 0)
        def _():
            s1_scr[...] = jnp.zeros_like(s1_scr)
            s2_scr[...] = jnp.zeros_like(s2_scr)
            xw = jnp.dot(h_scr[...], w_ref[0],
                         preferred_element_type=jnp.float32)
            xw_scr[...] = xw.astype(jnp.bfloat16)

        # BN pass 1 (row tiled): z_tile = A_hat[rows, :] @ XW.  z is stashed in
        # the node-embedding output buffer (whole-array resident) and the
        # per-feature sum / sum-of-squares are accumulated.  Padded rows of
        # A_hat are zero, so padded rows of z are zero and the statistics
        # divided by the true node count are exact.
        z = jnp.dot(a_ref[...], xw_scr[...],
                    preferred_element_type=jnp.float32)          # (tm, P) f32
        row0 = pl.multiple_of(i * tm, tm)
        node_ref[pl.ds(row0, tm), :] = z
        s1_scr[...] += jnp.sum(z, axis=0, keepdims=True)
        s2_scr[...] += jnp.sum(z * z, axis=0, keepdims=True)

        # BN pass 2 (per-layer epilogue, last row tile): normalize the full
        # resident z, scale/shift, ReLU; carry as bf16 for the next layer.
        # (GCNConv bias omitted: exactly cancelled by the mean subtraction.)
        @pl.when(i == nt - 1)
        def _():
            mean = s1_scr[...] * inv_n
            var = s2_scr[...] * inv_n - mean * mean
            inv_std = jax.lax.rsqrt(var + BN_EPS)
            hn = jnp.maximum(
                g_ref[0] * ((node_ref[...] - mean) * inv_std) + bt_ref[0], 0.0)
            h_scr[...] = hn.astype(jnp.bfloat16)
            node_ref[...] = hn

        # Final grid step: global max pool per graph + fc head.
        @pl.when(jnp.logical_and(l == num_layers - 1, i == nt - 1))
        def _():
            hn = node_ref[...]                         # (N, P) f32, post-ReLU
            ge_ref[...] = jnp.zeros_like(ge_ref)
            # h >= 0 after ReLU, so a multiplicative mask gives the exact
            # per-graph max; padded nodes / empty graphs pool to 0.
            for b in range(num_graphs):                # static python unroll
                m = mask_ref[:, b:b + 1].astype(jnp.float32)       # (N, 1)
                ge_ref[pl.ds(b, 1), :] = jnp.max(hn * m, axis=0, keepdims=True)
            out_ref[...] = (
                jnp.dot(ge_ref[...], wfc_ref[...],
                        preferred_element_type=jnp.float32) + bfc_ref[...])

    return kernel


def fused_gnn(a_hat, x_pad, w_stack, gamma_stack, beta_stack, mask_pad,
              wfc_pad, bfc_pad, *, n_real, num_graphs):
    """One pallas_call for the whole forward pass (padded, lane-dense shapes)."""
    num_layers, p, _ = w_stack.shape
    n_pad = x_pad.shape[0]
    g_rows = mask_pad.shape[1]
    c_pad = wfc_pad.shape[1]
    tm = _pick_row_tile(n_pad)
    nt = n_pad // tm

    in_specs = [
        pl.BlockSpec((n_pad, p), lambda l, i: (0, 0)),       # x (bf16, resident)
        pl.BlockSpec((tm, n_pad), lambda l, i: (i, 0)),      # A_hat rows (streamed)
        pl.BlockSpec((1, p, p), lambda l, i: (l, 0, 0)),     # W_l (bf16)
        pl.BlockSpec((1, 1, p), lambda l, i: (l, 0, 0)),     # gamma_l
        pl.BlockSpec((1, 1, p), lambda l, i: (l, 0, 0)),     # beta_l
        pl.BlockSpec((n_pad, g_rows), lambda l, i: (0, 0)),  # graph mask (bf16)
        pl.BlockSpec((p, c_pad), lambda l, i: (0, 0)),       # fc weight
        pl.BlockSpec((1, c_pad), lambda l, i: (0, 0)),       # fc bias
    ]
    out_specs = (
        pl.BlockSpec((n_pad, p), lambda l, i: (0, 0)),       # node embeddings
        pl.BlockSpec((g_rows, p), lambda l, i: (0, 0)),      # graph embeddings
        pl.BlockSpec((g_rows, c_pad), lambda l, i: (0, 0)),  # logits
    )
    scratch_shapes = [
        pltpu.VMEM((n_pad, p), jnp.bfloat16),   # h  (layer carry)
        pltpu.VMEM((n_pad, p), jnp.bfloat16),   # XW
        pltpu.VMEM((1, p), jnp.float32),        # BN sum
        pltpu.VMEM((1, p), jnp.float32),        # BN sum of squares
    ]

    # Generation-aware VMEM budget: resident arrays + double-buffered A tiles.
    est = (
        _phys_bytes((n_pad, p), 2)                           # x
        + 2 * _phys_bytes((tm, n_pad), 2)                    # A_hat double buffer
        + 2 * (_phys_bytes((1, p, p), 2)
               + 2 * _phys_bytes((1, 1, p), 4))              # W / gamma / beta
        + _phys_bytes((n_pad, g_rows), 2)                    # mask
        + _phys_bytes((p, c_pad), 4) + _phys_bytes((1, c_pad), 4)   # fc
        + _phys_bytes((n_pad, p), 4)                         # node output / z
        + _phys_bytes((g_rows, p), 4) + _phys_bytes((g_rows, c_pad), 4)
        + 2 * _phys_bytes((n_pad, p), 2)                     # h / xw scratch
        + 2 * _phys_bytes((1, p), 4)                         # BN stat scratch
    )
    try:
        vmem_cap = int(pltpu.get_tpu_info().vmem_capacity_bytes)
    except Exception:
        vmem_cap = 64 * 1024 * 1024       # most restrictive (v7x, per-TC)
    vmem_limit = int(min(vmem_cap - (4 << 20),
                         max(3 * est // 2 + (2 << 20), 32 << 20)))

    return pl.pallas_call(
        _make_fused_gnn_kernel(num_layers, num_graphs, n_real, tm),
        out_shape=(
            jax.ShapeDtypeStruct((n_pad, p), jnp.float32),     # node embeddings
            jax.ShapeDtypeStruct((g_rows, p), jnp.float32),    # graph embeddings
            jax.ShapeDtypeStruct((g_rows, c_pad), jnp.float32),  # logits
        ),
        grid_spec=pltpu.PrefetchScalarGridSpec(
            num_scalar_prefetch=0,
            grid=(num_layers, nt),
            in_specs=in_specs,
            out_specs=out_specs,
            scratch_shapes=scratch_shapes),
        compiler_params=pltpu.CompilerParams(
            # TODO(synk): row axis -> "parallel" on v7x once BN partials are
            # combined across TensorCores.
            dimension_semantics=("arbitrary", "arbitrary"),
            vmem_limit_bytes=vmem_limit),
    )(x_pad, a_hat, w_stack, gamma_stack, beta_stack, mask_pad, wfc_pad, bfc_pad)


# ---------------------------------------------------------------------------
# Glue: GCN normalized adjacency, parameter init, padding, full forward
# ---------------------------------------------------------------------------
def build_gcn_adj(edge_index, num_nodes, num_nodes_pad):
    """Dense D^{-1/2}(A + I)D^{-1/2}, zero-padded to (num_nodes_pad, num_nodes_pad)."""
    row = edge_index[0]
    col = edge_index[1]
    loop = jnp.arange(num_nodes, dtype=edge_index.dtype)
    row = jnp.concatenate([row, loop])
    col = jnp.concatenate([col, loop])
    w = jnp.ones(row.shape[0], jnp.float32)
    deg = jnp.zeros((num_nodes_pad,), jnp.float32).at[col].add(w)
    dinv = jnp.where(deg > 0, jax.lax.rsqrt(deg), 0.0)
    norm = dinv[row] * w * dinv[col]
    # aggregation at target i over sources j: A_hat[i, j]
    a = jnp.zeros((num_nodes_pad, num_nodes_pad), jnp.float32).at[col, row].add(norm)
    return a


def init_params(key, num_features, dim, num_classes, num_layers):
    params = {"layers": []}
    fan_in = num_features
    for _ in range(num_layers):
        key, kw = jax.random.split(key)
        limit = (6.0 / (fan_in + dim)) ** 0.5
        w = jax.random.uniform(kw, (fan_in, dim), jnp.float32, -limit, limit)
        b = jnp.zeros((1, dim), jnp.float32)          # GCNConv bias init
        gamma = jnp.ones((1, dim), jnp.float32)       # BatchNorm1d weight init
        beta = jnp.zeros((1, dim), jnp.float32)       # BatchNorm1d bias init
        params["layers"].append((w, b, gamma, beta))
        fan_in = dim
    key, kw, kb = jax.random.split(key, 3)
    limit = (1.0 / dim) ** 0.5
    params["fc_w"] = jax.random.uniform(kw, (dim, num_classes), jnp.float32, -limit, limit)
    params["fc_b"] = jax.random.uniform(kb, (1, num_classes), jnp.float32, -limit, limit)
    return params


def gnn_forward(x, edge_index, batch, params, num_graphs):
    n, f = x.shape
    dim = params["layers"][0][0].shape[1]
    num_classes = params["fc_w"].shape[1]

    # Padded, lane-dense shapes.  A single feature width P is used for every
    # layer so the per-layer weights can be stacked and indexed by the grid.
    p = _round_up(max(f, dim, 1), LANE)
    n_pad = _round_up(max(n, LANE), LANE)
    g_rows = _round_up(max(num_graphs, SUBLANE), SUBLANE)
    c_pad = _round_up(max(num_classes, LANE), LANE)

    # Normalized adjacency and input features in bf16 (MXU operands; matmuls
    # accumulate in f32).
    a_hat = build_gcn_adj(edge_index, n, n_pad).astype(jnp.bfloat16)
    x_pad = jnp.zeros((n_pad, p), jnp.bfloat16).at[:n, :f].set(x.astype(jnp.bfloat16))

    w_list, g_list, bt_list = [], [], []
    fan_in = f
    for (w, _b, gamma, beta) in params["layers"]:
        # GCNConv bias _b is dropped on purpose: BatchNorm cancels it exactly.
        w_p = jnp.zeros((p, p), jnp.float32).at[:fan_in, :dim].set(w)
        w_list.append(w_p.astype(jnp.bfloat16))
        g_list.append(jnp.zeros((1, p), jnp.float32).at[:, :dim].set(gamma))
        bt_list.append(jnp.zeros((1, p), jnp.float32).at[:, :dim].set(beta))
        fan_in = dim
    w_stack = jnp.stack(w_list)          # (L, P, P) bf16
    gamma_stack = jnp.stack(g_list)      # (L, 1, P) f32
    beta_stack = jnp.stack(bt_list)      # (L, 1, P) f32

    # Node -> graph membership mask; padded nodes (batch id -1) match no graph.
    batch_pad = jnp.full((n_pad,), -1, jnp.int32).at[:n].set(batch.astype(jnp.int32))
    mask_pad = (batch_pad[:, None] ==
                jnp.arange(g_rows, dtype=jnp.int32)[None, :]).astype(jnp.bfloat16)

    wfc_pad = jnp.zeros((p, c_pad), jnp.float32).at[:dim, :num_classes].set(params["fc_w"])
    bfc_pad = jnp.zeros((1, c_pad), jnp.float32).at[:, :num_classes].set(params["fc_b"])

    node_pad, ge_pad, out_pad = fused_gnn(
        a_hat, x_pad, w_stack, gamma_stack, beta_stack, mask_pad,
        wfc_pad, bfc_pad, n_real=n, num_graphs=num_graphs)

    node_embeddings = node_pad[:n, :dim]
    graph_embedding = ge_pad[:num_graphs, :dim]
    out = out_pad[:num_graphs, :num_classes]
    return node_embeddings, graph_embedding, out


# ---------------------------------------------------------------------------
if __name__ == "__main__":
    key = jax.random.PRNGKey(0)

    num_features = 8
    dim = 20
    num_classes = 2
    num_layers = 3

    # Two graphs of 8 nodes each, bidirectional ring edges within each graph.
    nodes_per_graph = 8
    num_graphs = 2
    n = nodes_per_graph * num_graphs
    edges = []
    for g in range(num_graphs):
        base = g * nodes_per_graph
        for i in range(nodes_per_graph):
            j = (i + 1) % nodes_per_graph
            edges.append((base + i, base + j))
            edges.append((base + j, base + i))
    edge_index = jnp.asarray(edges, dtype=jnp.int32).T            # (2, E)
    batch = jnp.asarray([0] * nodes_per_graph + [1] * nodes_per_graph, dtype=jnp.int32)

    key, kx, kp = jax.random.split(key, 3)
    x = jax.random.normal(kx, (n, num_features), jnp.float32)
    params = init_params(kp, num_features, dim, num_classes, num_layers)

    node_emb, graph_emb, out = gnn_forward(x, edge_index, batch, params, num_graphs)
    jax.block_until_ready((node_emb, graph_emb, out))

    assert node_emb.shape == (n, dim)
    assert graph_emb.shape == (num_graphs, dim)
    assert out.shape == (num_graphs, num_classes)
    assert bool(jnp.all(jnp.isfinite(node_emb)))
    assert bool(jnp.all(jnp.isfinite(graph_emb)))
    assert bool(jnp.all(jnp.isfinite(out)))
    print("KERNEL_OK")
</pallas_src>

<mosaic_0001>
module attributes {stable_mosaic.version = 11 : i64} {
  func.func @kernel(%arg0: i32, %arg1: i32, %arg2: memref<128x128xbf16, #tpu.memory_space<vmem>>, %arg3: memref<128x128xbf16, #tpu.memory_space<vmem>>, %arg4: memref<1x128x128xbf16, #tpu.memory_space<vmem>>, %arg5: memref<1x1x128xf32, #tpu.memory_space<vmem>>, %arg6: memref<1x1x128xf32, #tpu.memory_space<vmem>>, %arg7: memref<128x8xbf16, #tpu.memory_space<vmem>>, %arg8: memref<128x128xf32, #tpu.memory_space<vmem>>, %arg9: memref<1x128xf32, #tpu.memory_space<vmem>>, %arg10: memref<128x128xf32, #tpu.memory_space<vmem>>, %arg11: memref<8x128xf32, #tpu.memory_space<vmem>>, %arg12: memref<8x128xf32, #tpu.memory_space<vmem>>, %arg13: memref<128x128xbf16, #tpu.memory_space<vmem>>, %arg14: memref<128x128xbf16, #tpu.memory_space<vmem>>, %arg15: memref<1x128xf32, #tpu.memory_space<vmem>>, %arg16: memref<1x128xf32, #tpu.memory_space<vmem>>) attributes {dimension_semantics = [#tpu.dimension_semantics<arbitrary>, #tpu.dimension_semantics<arbitrary>], iteration_bounds = array<i64: 3, 1>, scalar_prefetch = 0 : i64, scratch_operands = 4 : i64, tpu.core_type = #tpu.core_type<tc>, window_params = [{pipeline_mode = #tpu.pipeline_mode<synchronous>, transform_indices = @transform_0, window_bounds = array<i64: 128, 128>}, {transform_indices = @transform_1, window_bounds = array<i64: 128, 128>}, {transform_indices = @transform_2, window_bounds = array<i64: 1, 128, 128>}, {transform_indices = @transform_3, window_bounds = array<i64: 1, 1, 128>}, {transform_indices = @transform_4, window_bounds = array<i64: 1, 1, 128>}, {pipeline_mode = #tpu.pipeline_mode<synchronous>, transform_indices = @transform_5, window_bounds = array<i64: 128, 8>}, {pipeline_mode = #tpu.pipeline_mode<synchronous>, transform_indices = @transform_6, window_bounds = array<i64: 128, 128>}, {pipeline_mode = #tpu.pipeline_mode<synchronous>, transform_indices = @transform_7, window_bounds = array<i64: 1, 128>}, {pipeline_mode = #tpu.pipeline_mode<synchronous>, transform_indices = @transform_8, window_bounds = array<i64: 128, 128>}, {pipeline_mode = #tpu.pipeline_mode<synchronous>, transform_indices = @transform_9, window_bounds = array<i64: 8, 128>}, {pipeline_mode = #tpu.pipeline_mode<synchronous>, transform_indices = @transform_10, window_bounds = array<i64: 8, 128>}]} {
    %c0_i32 = arith.constant 0 : i32
    %0 = arith.cmpi eq, %arg0, %c0_i32 : i32
    %c0_i32_0 = arith.constant 0 : i32
    %1 = arith.cmpi eq, %arg1, %c0_i32_0 : i32
    %2 = arith.andi %0, %1 : i1
    %3 = arith.extui %2 : i1 to i32
    %c0_i32_1 = arith.constant 0 : i32
    %4 = arith.cmpi ne, %3, %c0_i32_1 : i32
    scf.if %4 {
      %c0_22 = arith.constant 0 : index
      %c0_23 = arith.constant 0 : index
      %34 = vector.load %arg2[%c0_22, %c0_23] : memref<128x128xbf16, #tpu.memory_space<vmem>>, vector<128x128xbf16>
      %c0_24 = arith.constant 0 : index
      %c0_25 = arith.constant 0 : index
      %35 = vector.load %arg13[%c0_24, %c0_25] : memref<128x128xbf16, #tpu.memory_space<vmem>>, vector<128x128xbf16>
      tpu.vector_store %arg13[%c0_24, %c0_25], %34 {strides = array<i32>} : memref<128x128xbf16, #tpu.memory_space<vmem>>, vector<128x128xbf16>,
    } else {
    }
    %c0_i32_2 = arith.constant 0 : i32
    %5 = arith.cmpi eq, %arg1, %c0_i32_2 : i32
    %6 = arith.extui %5 : i1 to i32
    %c0_i32_3 = arith.constant 0 : i32
    %7 = arith.cmpi ne, %6, %c0_i32_3 : i32
    scf.if %7 {
      %cst_22 = arith.constant 0.000000e+00 : f32
      %34 = vector.broadcast %cst_22 : f32 to vector<1x128xf32>
      %c0_23 = arith.constant 0 : index
      %c0_24 = arith.constant 0 : index
      %35 = vector.load %arg15[%c0_23, %c0_24] : memref<1x128xf32, #tpu.memory_space<vmem>>, vector<1x128xf32>
      tpu.vector_store %arg15[%c0_23, %c0_24], %34 {strides = array<i32>} : memref<1x128xf32, #tpu.memory_space<vmem>>, vector<1x128xf32>,
      %cst_25 = arith.constant 0.000000e+00 : f32
      %36 = vector.broadcast %cst_25 : f32 to vector<1x128xf32>
      %c0_26 = arith.constant 0 : index
      %c0_27 = arith.constant 0 : index
      %37 = vector.load %arg16[%c0_26, %c0_27] : memref<1x128xf32, #tpu.memory_space<vmem>>, vector<1x128xf32>
      tpu.vector_store %arg16[%c0_26, %c0_27], %36 {strides = array<i32>} : memref<1x128xf32, #tpu.memory_space<vmem>>, vector<1x128xf32>,
      %c0_28 = arith.constant 0 : index
      %c0_29 = arith.constant 0 : index
      %38 = vector.load %arg13[%c0_28, %c0_29] : memref<128x128xbf16, #tpu.memory_space<vmem>>, vector<128x128xbf16>
      %c0_30 = arith.constant 0 : index
      %c0_31 = arith.constant 0 : index
      %c0_32 = arith.constant 0 : index
      %39 = vector.load %arg4[%c0_30, %c0_31, %c0_32] : memref<1x128x128xbf16, #tpu.memory_space<vmem>>, vector<1x128x128xbf16>
      %40 = vector.shape_cast %39 : vector<1x128x128xbf16> to vector<128x128xbf16>
      %cst_33 = arith.constant dense<0.000000e+00> : vector<128x128xf32>
      %41 = tpu.matmul %38, %40, %cst_33 {dimension_numbers = #tpu.dot_dimension_numbers<[1], [0], [0], [1], [0, 0, 1, 1], [], []>} : vector<128x128xbf16>, vector<128x128xbf16>, vector<128x128xf32> -> vector<128x128xf32>
      %42 = arith.truncf %41 : vector<128x128xf32> to vector<128x128xbf16>
      %c0_34 = arith.constant 0 : index
      %c0_35 = arith.constant 0 : index
      %43 = vector.load %arg14[%c0_34, %c0_35] : memref<128x128xbf16, #tpu.memory_space<vmem>>, vector<128x128xbf16>
      tpu.vector_store %arg14[%c0_34, %c0_35], %42 {strides = array<i32>} : memref<128x128xbf16, #tpu.memory_space<vmem>>, vector<128x128xbf16>,
    } else {
    }
    %c0 = arith.constant 0 : index
    %c0_4 = arith.constant 0 : index
    %8 = vector.load %arg3[%c0, %c0_4] : memref<128x128xbf16, #tpu.memory_space<vmem>>, vector<128x128xbf16>
    %c0_5 = arith.constant 0 : index
    %c0_6 = arith.constant 0 : index
    %9 = vector.load %arg14[%c0_5, %c0_6] : memref<128x128xbf16, #tpu.memory_space<vmem>>, vector<128x128xbf16>
    %cst = arith.constant dense<0.000000e+00> : vector<128x128xf32>
    %10 = tpu.matmul %8, %9, %cst {dimension_numbers = #tpu.dot_dimension_numbers<[1], [0], [0], [1], [0, 0, 1, 1], [], []>} : vector<128x128xbf16>, vector<128x128xbf16>, vector<128x128xf32> -> vector<128x128xf32>
    %c128_i32 = arith.constant 128 : i32
    %11 = arith.muli %arg1, %c128_i32 : i32
    %12 = tpu.assume_multiple %11, 128 : i32
    %13 = arith.index_cast %12 : i32 to index
    %c0_7 = arith.constant 0 : index
    %14 = vector.load %arg10[%13, %c0_7] : memref<128x128xf32, #tpu.memory_space<vmem>>, vector<128x128xf32>
    tpu.vector_store %arg10[%13, %c0_7], %10 {strides = array<i32>} : memref<128x128xf32, #tpu.memory_space<vmem>>, vector<128x128xf32>,
    %c0_8 = arith.constant 0 : index
    %c0_9 = arith.constant 0 : index
    %15 = vector.load %arg15[%c0_8, %c0_9] : memref<1x128xf32, #tpu.memory_space<vmem>>, vector<1x128xf32>
    %cst_10 = arith.constant dense<0.000000e+00> : vector<128xf32>
    %16 = vector.multi_reduction <add>, %10, %cst_10 [0] : vector<128x128xf32> to vector<128xf32>
    %17 = vector.shape_cast %16 : vector<128xf32> to vector<1x128xf32>
    %18 = arith.addf %15, %17 : vector<1x128xf32>
    %c0_11 = arith.constant 0 : index
    %c0_12 = arith.constant 0 : index
    %19 = vector.load %arg15[%c0_11, %c0_12] : memref<1x128xf32, #tpu.memory_space<vmem>>, vector<1x128xf32>
    tpu.vector_store %arg15[%c0_11, %c0_12], %18 {strides = array<i32>} : memref<1x128xf32, #tpu.memory_space<vmem>>, vector<1x128xf32>,
    %c0_13 = arith.constant 0 : index
    %c0_14 = arith.constant 0 : index
    %20 = vector.load %arg16[%c0_13, %c0_14] : memref<1x128xf32, #tpu.memory_space<vmem>>, vector<1x128xf32>
    %21 = arith.mulf %10, %10 : vector<128x128xf32>
    %cst_15 = arith.constant dense<0.000000e+00> : vector<128xf32>
    %22 = vector.multi_reduction <add>, %21, %cst_15 [0] : vector<128x128xf32> to vector<128xf32>
    %23 = vector.shape_cast %22 : vector<128xf32> to vector<1x128xf32>
    %24 = arith.addf %20, %23 : vector<1x128xf32>
    %c0_16 = arith.constant 0 : index
    %c0_17 = arith.constant 0 : index
    %25 = vector.load %arg16[%c0_16, %c0_17] : memref<1x128xf32, #tpu.memory_space<vmem>>, vector<1x128xf32>
    tpu.vector_store %arg16[%c0_16, %c0_17], %24 {strides = array<i32>} : memref<1x128xf32, #tpu.memory_space<vmem>>, vector<1x128xf32>,
    %c0_i32_18 = arith.constant 0 : i32
    %26 = arith.cmpi eq, %arg1, %c0_i32_18 : i32
    %27 = arith.extui %26 : i1 to i32
    %c0_i32_19 = arith.constant 0 : i32
    %28 = arith.cmpi ne, %27, %c0_i32_19 : i32
    scf.if %28 {
      %c0_22 = arith.constant 0 : index
      %c0_23 = arith.constant 0 : index
      %34 = vector.load %arg15[%c0_22, %c0_23] : memref<1x128xf32, #tpu.memory_space<vmem>>, vector<1x128xf32>
      %cst_24 = arith.constant 6.250000e-02 : f32
      %35 = vector.broadcast %cst_24 : f32 to vector<1x128xf32>
      %36 = arith.mulf %34, %35 : vector<1x128xf32>
      %c0_25 = arith.constant 0 : index
      %c0_26 = arith.constant 0 : index
      %37 = vector.load %arg16[%c0_25, %c0_26] : memref<1x128xf32, #tpu.memory_space<vmem>>, vector<1x128xf32>
      %cst_27 = arith.constant 6.250000e-02 : f32
      %38 = vector.broadcast %cst_27 : f32 to vector<1x128xf32>
      %39 = arith.mulf %37, %38 : vector<1x128xf32>
      %40 = arith.mulf %36, %36 : vector<1x128xf32>
      %41 = arith.subf %39, %40 : vector<1x128xf32>
      %cst_28 = arith.constant 9.99999974E-6 : f32
      %42 = vector.broadcast %cst_28 : f32 to vector<1x128xf32>
      %43 = arith.addf %41, %42 : vector<1x128xf32>
      %44 = math.rsqrt %43 : vector<1x128xf32>
      %c0_29 = arith.constant 0 : index
      %c0_30 = arith.constant 0 : index
      %c0_31 = arith.constant 0 : index
      %45 = vector.load %arg5[%c0_29, %c0_30, %c0_31] : memref<1x1x128xf32, #tpu.memory_space<vmem>>, vector<1x1x128xf32>
      %46 = vector.shape_cast %45 : vector<1x1x128xf32> to vector<1x128xf32>
      %c0_32 = arith.constant 0 : index
      %c0_33 = arith.constant 0 : index
      %47 = vector.load %arg10[%c0_32, %c0_33] : memref<128x128xf32, #tpu.memory_space<vmem>>, vector<128x128xf32>
      %48 = vector.broadcast %36 : vector<1x128xf32> to vector<128x128xf32>
      %49 = arith.subf %47, %48 : vector<128x128xf32>
      %50 = vector.broadcast %44 : vector<1x128xf32> to vector<128x128xf32>
      %51 = arith.mulf %49, %50 : vector<128x128xf32>
      %52 = vector.broadcast %46 : vector<1x128xf32> to vector<128x128xf32>
      %53 = arith.mulf %52, %51 : vector<128x128xf32>
      %c0_34 = arith.constant 0 : index
      %c0_35 = arith.constant 0 : index
      %c0_36 = arith.constant 0 : index
      %54 = vector.load %arg6[%c0_34, %c0_35, %c0_36] : memref<1x1x128xf32, #tpu.memory_space<vmem>>, vector<1x1x128xf32>
      %55 = vector.shape_cast %54 : vector<1x1x128xf32> to vector<1x128xf32>
      %56 = vector.broadcast %55 : vector<1x128xf32> to vector<128x128xf32>
      %57 = arith.addf %53, %56 : vector<128x128xf32>
      %cst_37 = arith.constant 0.000000e+00 : f32
      %58 = vector.broadcast %cst_37 : f32 to vector<128x128xf32>
      %59 = arith.maximumf %57, %58 : vector<128x128xf32>
      %60 = arith.truncf %59 : vector<128x128xf32> to vector<128x128xbf16>
      %c0_38 = arith.constant 0 : index
      %c0_39 = arith.constant 0 : index
      %61 = vector.load %arg13[%c0_38, %c0_39] : memref<128x128xbf16, #tpu.memory_space<vmem>>, vector<128x128xbf16>
      tpu.vector_store %arg13[%c0_38, %c0_39], %60 {strides = array<i32>} : memref<128x128xbf16, #tpu.memory_space<vmem>>, vector<128x128xbf16>,
      %c0_40 = arith.constant 0 : index
      %c0_41 = arith.constant 0 : index
      %62 = vector.load %arg10[%c0_40, %c0_41] : memref<128x128xf32, #tpu.memory_space<vmem>>, vector<128x128xf32>
      tpu.vector_store %arg10[%c0_40, %c0_41], %59 {strides = array<i32>} : memref<128x128xf32, #tpu.memory_space<vmem>>, vector<128x128xf32>,
    } else {
    }
    %c2_i32 = arith.constant 2 : i32
    %29 = arith.cmpi eq, %arg0, %c2_i32 : i32
    %c0_i32_20 = arith.constant 0 : i32
    %30 = arith.cmpi eq, %arg1, %c0_i32_20 : i32
    %31 = arith.andi %29, %30 : i1
    %32 = arith.extui %31 : i1 to i32
    %c0_i32_21 = arith.constant 0 : i32
    %33 = arith.cmpi ne, %32, %c0_i32_21 : i32
    scf.if %33 {
      %c0_22 = arith.constant 0 : index
      %c0_23 = arith.constant 0 : index
      %34 = vector.load %arg10[%c0_22, %c0_23] : memref<128x128xf32, #tpu.memory_space<vmem>>, vector<128x128xf32>
      %cst_24 = arith.constant 0.000000e+00 : f32
      %35 = vector.broadcast %cst_24 : f32 to vector<8x128xf32>
      %c0_25 = arith.constant 0 : index
      %c0_26 = arith.constant 0 : index
      %36 = vector.load %arg11[%c0_25, %c0_26] : memref<8x128xf32, #tpu.memory_space<vmem>>, vector<8x128xf32>
      tpu.vector_store %arg11[%c0_25, %c0_26], %35 {strides = array<i32>} : memref<8x128xf32, #tpu.memory_space<vmem>>, vector<8x128xf32>,
      %c0_27 = arith.constant 0 : index
      %c0_28 = arith.constant 0 : index
      %37 = vector.load %arg7[%c0_27, %c0_28] : memref<128x8xbf16, #tpu.memory_space<vmem>>, vector<128x1xbf16>
      %38 = arith.extf %37 : vector<128x1xbf16> to vector<128x1xf32>
      %39 = vector.broadcast %38 : vector<128x1xf32> to vector<128x128xf32>
      %40 = arith.mulf %34, %39 : vector<128x128xf32>
      %cst_29 = arith.constant dense<0xFF800000> : vector<128xf32>
      %41 = vector.multi_reduction <maximumf>, %40, %cst_29 [0] : vector<128x128xf32> to vector<128xf32>
      %42 = vector.shape_cast %41 : vector<128xf32> to vector<1x128xf32>
      %c0_30 = arith.constant 0 : index
      %c0_31 = arith.constant 0 : index
      %43 = vector.load %arg11[%c0_30, %c0_31] : memref<8x128xf32, #tpu.memory_space<vmem>>, vector<1x128xf32>
      tpu.vector_store %arg11[%c0_30, %c0_31], %42 {strides = array<i32>} : memref<8x128xf32, #tpu.memory_space<vmem>>, vector<1x128xf32>,
      %c0_32 = arith.constant 0 : index
      %c1 = arith.constant 1 : index
      %44 = vector.load %arg7[%c0_32, %c1] : memref<128x8xbf16, #tpu.memory_space<vmem>>, vector<128x1xbf16>
      %45 = arith.extf %44 : vector<128x1xbf16> to vector<128x1xf32>
      %46 = vector.broadcast %45 : vector<128x1xf32> to vector<128x128xf32>
      %47 = arith.mulf %34, %46 : vector<128x128xf32>
      %cst_33 = arith.constant dense<0xFF800000> : vector<128xf32>
      %48 = vector.multi_reduction <maximumf>, %47, %cst_33 [0] : vector<128x128xf32> to vector<128xf32>
      %49 = vector.shape_cast %48 : vector<128xf32> to vector<1x128xf32>
      %c1_34 = arith.constant 1 : index
      %c0_35 = arith.constant 0 : index
      %50 = vector.load %arg11[%c1_34, %c0_35] : memref<8x128xf32, #tpu.memory_space<vmem>>, vector<1x128xf32>
      tpu.vector_store %arg11[%c1_34, %c0_35], %49 {strides = array<i32>} : memref<8x128xf32, #tpu.memory_space<vmem>>, vector<1x128xf32>,
      %c0_36 = arith.constant 0 : index
      %c0_37 = arith.constant 0 : index
      %51 = vector.load %arg11[%c0_36, %c0_37] : memref<8x128xf32, #tpu.memory_space<vmem>>, vector<8x128xf32>
      %c0_38 = arith.constant 0 : index
      %c0_39 = arith.constant 0 : index
      %52 = vector.load %arg8[%c0_38, %c0_39] : memref<128x128xf32, #tpu.memory_space<vmem>>, vector<128x128xf32>
      %cst_40 = arith.constant dense<0.000000e+00> : vector<8x128xf32>
      %53 = tpu.matmul %51, %52, %cst_40 {dimension_numbers = #tpu.dot_dimension_numbers<[1], [0], [0], [1], [0, 0, 1, 1], [], []>} : vector<8x128xf32>, vector<128x128xf32>, vector<8x128xf32> -> vector<8x128xf32>
      %c0_41 = arith.constant 0 : index
      %c0_42 = arith.constant 0 : index
      %54 = vector.load %arg9[%c0_41, %c0_42] : memref<1x128xf32, #tpu.memory_space<vmem>>, vector<1x128xf32>
      %55 = vector.broadcast %54 : vector<1x128xf32> to vector<8x128xf32>
      %56 = arith.addf %53, %55 : vector<8x128xf32>
      %c0_43 = arith.constant 0 : index
      %c0_44 = arith.constant 0 : index
      %57 = vector.load %arg12[%c0_43, %c0_44] : memref<8x128xf32, #tpu.memory_space<vmem>>, vector<8x128xf32>
      tpu.vector_store %arg12[%c0_43, %c0_44], %56 {strides = array<i32>} : memref<8x128xf32, #tpu.memory_space<vmem>>, vector<8x128xf32>,
    } else {
    }
    return
  }
  func.func @transform_0(%arg0: i32, %arg1: i32) -> (i32, i32) {
    %c0_i32 = arith.constant 0 : i32
    %c0_i32_0 = arith.constant 0 : i32
    %c0_i32_1 = arith.constant 0 : i32
    return %c0_i32, %c0_i32_0 : i32, i32
  }
  func.func @transform_1(%arg0: i32, %arg1: i32) -> (i32, i32) {
    %c0_i32 = arith.constant 0 : i32
    %c0_i32_0 = arith.constant 0 : i32
    return %arg1, %c0_i32 : i32, i32
  }
  func.func @transform_2(%arg0: i32, %arg1: i32) -> (i32, i32, i32) {
    %c0_i32 = arith.constant 0 : i32
    %c0_i32_0 = arith.constant 0 : i32
    %c0_i32_1 = arith.constant 0 : i32
    return %arg0, %c0_i32, %c0_i32_0 : i32, i32, i32
  }
  func.func @transform_3(%arg0: i32, %arg1: i32) -> (i32, i32, i32) {
    %c0_i32 = arith.constant 0 : i32
    %c0_i32_0 = arith.constant 0 : i32
    %c0_i32_1 = arith.constant 0 : i32
    return %arg0, %c0_i32, %c0_i32_0 : i32, i32, i32
  }
  func.func @transform_4(%arg0: i32, %arg1: i32) -> (i32, i32, i32) {
    %c0_i32 = arith.constant 0 : i32
    %c0_i32_0 = arith.constant 0 : i32
    %c0_i32_1 = arith.constant 0 : i32
    return %arg0, %c0_i32, %c0_i32_0 : i32, i32, i32
  }
  func.func @transform_5(%arg0: i32, %arg1: i32) -> (i32, i32) {
    %c0_i32 = arith.constant 0 : i32
    %c0_i32_0 = arith.constant 0 : i32
    %c0_i32_1 = arith.constant 0 : i32
    return %c0_i32, %c0_i32_0 : i32, i32
  }
  func.func @transform_6(%arg0: i32, %arg1: i32) -> (i32, i32) {
    %c0_i32 = arith.constant 0 : i32
    %c0_i32_0 = arith.constant 0 : i32
    %c0_i32_1 = arith.constant 0 : i32
    return %c0_i32, %c0_i32_0 : i32, i32
  }
  func.func @transform_7(%arg0: i32, %arg1: i32) -> (i32, i32) {
    %c0_i32 = arith.constant 0 : i32
    %c0_i32_0 = arith.constant 0 : i32
    %c0_i32_1 = arith.constant 0 : i32
    return %c0_i32, %c0_i32_0 : i32, i32
  }
  func.func @transform_8(%arg0: i32, %arg1: i32) -> (i32, i32) {
    %c0_i32 = arith.constant 0 : i32
    %c0_i32_0 = arith.constant 0 : i32
    %c0_i32_1 = arith.constant 0 : i32
    return %c0_i32, %c0_i32_0 : i32, i32
  }
  func.func @transform_9(%arg0: i32, %arg1: i32) -> (i32, i32) {
    %c0_i32 = arith.constant 0 : i32
    %c0_i32_0 = arith.constant 0 : i32
    %c0_i32_1 = arith.constant 0 : i32
    return %c0_i32, %c0_i32_0 : i32, i32
  }
  func.func @transform_10(%arg0: i32, %arg1: i32) -> (i32, i32) {
    %c0_i32 = arith.constant 0 : i32
    %c0_i32_0 = arith.constant 0 : i32
    %c0_i32_1 = arith.constant 0 : i32
    return %c0_i32, %c0_i32_0 : i32, i32
  }
}

</mosaic_0001>

<bundles_post_ra>
// kernel: tpu_custom_call.1
= control target key start
LH: loop header
LB: loop body
LE: loop exit
PB: predicated region body
PF: predicated region fallthrough
CT: control target
= control target key end

     0   :  { %s3257_s0 = inlined_call_operand.vmem [shape: bf16[128,128], index: 0, kind: input, shape index: {}]   ;;  %s3258_s1 = inlined_call_operand.hbm [shape: bf16[128,128], index: 1, kind: input, shape index: {}]   ;;  %s3259_s2 = inlined_call_operand.hbm [shape: bf16[3,128,128], index: 2, kind: input, shape index: {}]   ;;  %s3260_s3 = inlined_call_operand.vmem [shape: f32[3,1,128], index: 3, kind: input, shape index: {}]   ;;  %s3261_s4 = inlined_call_operand.vmem [shape: f32[3,1,128], index: 4, kind: input, shape index: {}]   ;;  %s3262_s5 = inlined_call_operand.vmem [shape: bf16[128,8], index: 5, kind: input, shape index: {}]   ;;  %s3263_s6 = inlined_call_operand.hbm [shape: f32[128,128], index: 6, kind: input, shape index: {}]   ;;  %s3264_s7 = inlined_call_operand.vmem [shape: f32[1,128], index: 7, kind: input, shape index: {}]   ;;  %s3265_s8 = inlined_call_operand.hbm [shape: f32[128,128], index: 8, kind: output, shape index: {0}]   ;;  %s3266_s9 = inlined_call_operand.hbm [shape: f32[8,128], index: 9, kind: output, shape index: {1}]   ;;  %s3267_s10 = inlined_call_operand.hbm [shape: f32[8,128], index: 10, kind: output, shape index: {2}]  }
   0x1   :  { %3270 = sst [smem:[#allocation21_spill]] %s3262_s5 }
   0x2   :  { %3271 = sst [smem:[#allocation22_spill]] %s3263_s6 }
   0x3   :  { %3272 = sst [smem:[#allocation23_spill]] %s3264_s7 }
   0x4   :  { %3273 = sst [smem:[#allocation24_spill]] %s3265_s8 }
   0x5   :  { %3274 = sst [smem:[#allocation25_spill]] %s3266_s9 }
   0x6   :  { %3275 = sst [smem:[#allocation26_spill]] %s3267_s10 }
   0x7   :  { %16 = vsyncpa [#allocation7], 0 }
   0x8   :  { %17 = vsyncpa [#allocation10], 0 }
   0x9   :  { %19 = vsyncpa [#allocation10 + $0x1], 0 }
   0xa   :  { %20 = vsyncpa [#allocation8], 0 }
   0xb   :  { %21 = vsyncpa [#allocation14], 0  ;;  %s2862_s13 = smov 0   ;;  %s2864_s14 = smov 0  }
   0xc   :  { %s2866_s15 = smov 0   ;;  %s2868_s16 = smov 0  }
   0xd   :  { %s2870_s17 = smov 0   ;;  %s2872_s18 = smov 0  }
   0xe LB: > { %s2891_s19 = sadd.s32 4294967295, %s2788_s18   ;;  %p100_p0 = scmp.ne.s32.totalorder %s2776_s15, %s2772_s14  ;;  %s2788_s18 = sphi %s2872_s18, %s27_s18   ;;  %s2784_s17 = sphi %s2870_s17, %s3296_s17   ;;  %s2780_s16 = sphi %s2868_s16, %s3295_s16   ;;  %s2776_s15 = sphi %s2866_s15, %s3294_s15   ;;  %s2772_s14 = sphi %s2864_s14, %s3293_s14   ;;  %s2768_s13 = sphi %s2862_s13, %s3292_s13  }
   0xf   : > { %p101_p1 = scmp.eq.s32.totalorder %s2788_s18, 0  ;;  %p106_p2 = scmp.ne.s32.totalorder %s2772_s14, %s2768_s13 }
  0x10   : > { %p3268_p3 = scmp.eq.s32.totalorder %s2891_s19, 0  ;;  %p1897_p4 = scmp.ge.s32.totalorder %s2788_s18, 1 }
  0x11   : > { %p102_p5 = por %p101_p1, %p100_p0  ;;  %p295_p6 = scmp.lt.s32.totalorder %s2788_s18, 4 }
  0x12   : > { %p2902_p7 = por %p3268_p3, %p106_p2  ;;  %s2790_s22 = smov [#allocation11]  }
  0x13   : > { %p2906_p8 = pnand %p1897_p4, %p295_p6  ;;  %s329_s23 = sshll.u32 %s2790_s22, 4  ;;  %s330_s23 = int_to_ptr.vmem [resolvable:$true] %s329_s23 }
  0x14   : > { %p2375_p11 = scmp.lt.s32.totalorder %s2788_s18, 3  ;;  %s2581_s26 = scalar_lea.vmem %s330_s23, 2048 }
  0x15   : > { %p2362_p9 = pneg %p2906_p8  ;;  %p2582_p0 = scmp.ne.s32.totalorder %s330_s23, %s2581_s26 }
  0x16   : > { %p2919_p12 = pnand %p2375_p11, %p102_p5  ;;  %p2589_p4 = scmp.lt.s32.totalorder %s330_s23, %s330_s23 }
  0x17   : > { %p2914_p10 = pnand %p2362_p9, %p3268_p3  ;;  %p2590_p6 = scmp.lt.s32.totalorder %s2581_s26, %s2581_s26 }
  0x19   : > { %p2572_p13 = pneg %p2914_p10  ;;  %p2591_p9 = por %p2590_p6, %p2589_p4 }
  0x1b   : > { %p2584_p1 = pnand %p2582_p0, %p2572_p13 }
  0x1d   : > { %p2585_p2 = pneg %p2584_p1 }
  0x1f   : > { %p2592_p3 = pnand %p2591_p9, %p2585_p2 }
  0x21   : > { %2595 = shalt.err (!%p2592_p3)
}
  0x22   : > { %s2791_s27 = smov 128   ;;  %s2792_s28 = smov 8  }
  0x23   : > { %s3280_s6 = sld [smem:[#allocation22_spill]]  ;;  %s2793_s11 = smov [#allocation6]  }
  0x24   : > { %s313_s12 = sshll.u32 %s2793_s11, 4  ;;  %s314_s12 = int_to_ptr.vmem [resolvable:$true] %s313_s12 }
  0x25   : > { %s2607_s13 = scalar_lea.vmem %s314_s12, 1024  ;;  %p2615_p1 = scmp.lt.s32.totalorder %s314_s12, %s314_s12 }
  0x26   : > { %p2608_p5 = scmp.ne.s32.totalorder %s314_s12, %s2607_s13  ;;  %p2616_p3 = scmp.lt.s32.totalorder %s2607_s13, %s2607_s13 }
  0x28   : > { %p2610_p11 = pnand %p2608_p5, %p2572_p13  ;;  %p2617_p2 = por %p2616_p3, %p2615_p1 }
  0x29   : > { %2368 = dma.hbm_to_vmem [thread:$0]  (!%p2914_p10), %s3280_s6, 2048, %s330_s23, [#allocation10], %s2791_s27, %s2791_s27, %s2792_s28  }
  0x2a   : > { %p2611_p0 = pneg %p2610_p11 }
  0x2c   : > { %p2618_p4 = pnand %p2617_p2, %p2611_p0 }
  0x2e   : > { %2621 = shalt.err (!%p2618_p4)
}
  0x2f   : > { %s2794_s22 = smov 64   ;;  %s2795_s23 = smov 4  }
  0x30   : > { %2365 = dma.hbm_to_vmem [thread:$0]  (!%p2914_p10), %s3258_s1, 1024, %s314_s12, [#allocation7], %s2794_s22, %s2794_s22, %s2795_s23  }
  0x31   : > { %s346_s29 = sand.u32 1, %s2788_s18   ;;  %s39_s30 = sadd.s32 1, %s2784_s17 }
  0x32   : > { %p41_p13 = scmp.ge.s32.totalorder %s39_s30, 3  ;;  %s348_s11 = sand.u32 1, %s2776_s15  }
  0x33   : > { %s1901_s13 = sshll.u32 %s348_s11, 6  ;;  %s1985_s6 = sshll.u32 %s2784_s17, 10 }
  0x34   : > { %s3298_s30 = smov (%p41_p13, %s39_s30), 0  ;;  %s356_s24 = scalar_lea.hbm %s3259_s2, %s1985_s6 }
  0x35   : > { %s90_s9 = ssub.s32 %s2784_s17, %s3298_s30  ;;  %s350_s7 = scalar_lea.vmem [#allocation9], %s1901_s13 }
  0x36   : > { %s357_s5 = sshll.u32 %s350_s7, 4  ;;  %p2956_p6 = scmp.eq.s32.totalorder %s90_s9, 0  ;;  %s358_s5 = int_to_ptr.vmem [resolvable:$true] %s357_s5 }
  0x37   : > { %s347_s26 = scalar_lea.sflag [#allocation10], %s346_s29  ;;  %p2624_p10 = pneg %p2919_p12 }
  0x38   : > { %s2635_s27 = scalar_lea.vmem %s358_s5, 1024  ;;  %s2796_s11 = smov [#allocation9]  }
  0x39   : > { %p2636_p9 = scmp.ne.s32.totalorder %s358_s5, %s2635_s27  ;;  %s2640_s28 = sshll.u32 %s2796_s11, 4  ;;  %s2641_s28 = int_to_ptr.vmem [resolvable:$false] %s2640_s28 }
  0x3a   : > { %s2642_s8 = scalar_lea.vmem %s2641_s28, 2048  ;;  %p2643_p0 = scmp.lt.s32.totalorder %s358_s5, %s2641_s28 }
  0x3b   : > { %p2638_p5 = pnand %p2636_p9, %p2624_p10  ;;  %p2644_p1 = scmp.lt.s32.totalorder %s2642_s8, %s2635_s27 }
  0x3d   : > { %p2639_p11 = pneg %p2638_p5  ;;  %p2645_p3 = por %p2644_p1, %p2643_p0 }
  0x3f   : > { %p2646_p2 = pnand %p2645_p3, %p2639_p11 }
  0x41   : > { %2649 = shalt.err (!%p2646_p2)
}
  0x42   : > { %2372 = dma.hbm_to_vmem [thread:$0]  (!%p2919_p12), %s356_s24, 1024, %s358_s5, %s347_s26, %s2794_s22, %s2794_s22, %s2795_s23  }
  0x43   : > { %s3282_s6 = sadd.s32 1, %s2776_s15  ;;  %381 = sbr.rel (%p2906_p8) target bundleno = 1116 (0x45c), region = 52 }
  0x44   : > { %s2972_s7 = scalar_select %p2956_p6, %s2776_s15, %s3282_s6  }
  0x45   : > { %p3283_p4 = scmp.eq.s32.totalorder (!%p2906_p8), %s2891_s19, 0 }
  0x48   : > { %2747 = dma.done.wait (%p3283_p4), [#allocation7], 1024   ;;  %p3284_p13 = pmov %p3283_p4 }
  0x49   : > { %s387_s9 = sand.u32 1, %s2891_s19   ;;  %s389_s10 = sand.u32 1, %s2772_s14  }
  0x4a   : > { %2749 = vsyncadd (%p3284_p13), [#allocation7], 4294966272  ;;  %s1906_s25 = sshll.u32 %s389_s10, 6  ;;  %s388_s5 = scalar_lea.sflag [#allocation10], %s387_s9 }
  0x4b   : > { %s2982_s22 = scalar_lea.vmem [#allocation9], %s1906_s25 }
  0x4c   : > { %2751 = dma.done.wait (%p2902_p7), %s388_s5, 1024  }
  0x4d   : > { %2753 = vsyncadd (%p2902_p7), %s388_s5, 4294966272  ;;  %p3285_p8 = pmov %p3283_p4 }
  0x4e   : > { %p3286_p12 = pmov %p3283_p4 }
  0x4f   : > { %2755 = dma.done.wait (%p3285_p8), [#allocation10], 2048  }
  0x50   : > { %2757 = vsyncadd (%p3286_p12), [#allocation10], 4294965248  ;;  %p434_p6 = scmp.lt.s32.totalorder %s2780_s16, 2  ;;  %p441_p10 = scmp.eq.s32.totalorder %s2780_s16, 0 }
  0x51   : > { %v447_v0 = vld [vmem:[%s3257_s0] sm:$0xff] (%p441_p10)   ;;  %v449_v1 = vld [vmem:[%s3257_s0 + $0x8] sm:$0xff] (%p441_p10)   ;;  %v451_v2 = vld [vmem:[%s3257_s0 + $0x10] sm:$0xff] (%p441_p10)  }
  0x52   : > { %s2995_s21 = scalar_select %p434_p6, %s2780_s16, 2  ;;  %463 = vst [vmem:[#allocation2] sm:$0xff] (%p441_p10), %v447_v0   ;;  %465 = vst [vmem:[#allocation2 + $0x8] sm:$0xff] (%p441_p10), %v449_v1   ;;  %v453_v3 = vld [vmem:[%s3257_s0 + $0x18] sm:$0xff] (%p441_p10)   ;;  %v455_v4 = vld [vmem:[%s3257_s0 + $0x20] sm:$0xff] (%p441_p10)  }
  0x53   : > { %446 = sbr.rel (!%p441_p10) target bundleno = 88 (0x58), region = 68  ;;  %467 = vst [vmem:[#allocation2 + $0x10] sm:$0xff] (%p441_p10), %v451_v2   ;;  %v457_v5 = vld [vmem:[%s3257_s0 + $0x28] sm:$0xff] (%p441_p10)   ;;  %469 = vst [vmem:[#allocation2 + $0x18] sm:$0xff] (%p441_p10), %v453_v3   ;;  %v459_v6 = vld [vmem:[%s3257_s0 + $0x30] sm:$0xff] (%p441_p10)  }
  0x54   : > { %s436_s20 = scalar_lea.vmem %s3260_s3, %s2995_s21  ;;  %s439_s24 = scalar_lea.vmem %s3261_s4, %s2995_s21  ;;  %471 = vst [vmem:[#allocation2 + $0x20] sm:$0xff] (%p441_p10), %v455_v4   ;;  %473 = vst [vmem:[#allocation2 + $0x28] sm:$0xff] (%p441_p10), %v457_v5   ;;  %v461_v7 = vld [vmem:[%s3257_s0 + $0x38] sm:$0xff] (%p441_p10)  }
  0x55   : > { %475 = vst [vmem:[#allocation2 + $0x30] sm:$0xff] (%p441_p10), %v459_v6   ;;  %477 = vst [vmem:[#allocation2 + $0x38] sm:$0xff] (%p441_p10), %v461_v7  }
  0x58 PF: > { %v2448_v8 = vld [vmem:[%s2982_s22 + $0x38] sm:$0xff]   ;;  %v2449_v9 = vld [vmem:[%s2982_s22 + $0x30] sm:$0xff]   ;;  %v2450_v10 = vld [vmem:[%s2982_s22 + $0x28] sm:$0xff]   ;;  %v2797_v0 = vmov 0.0   ;;  %p1325_p7 = scmp.eq.s32.totalorder %s2780_s16, 2 }
  0x59   : > { %2241 = vmatprep.subr.bf16.mxu0 %v2448_v8  ;;  %v2451_v11 = vld [vmem:[%s2982_s22 + $0x20] sm:$0xff]   ;;  %v2452_v13 = vld [vmem:[%s2982_s22 + $0x18] sm:$0xff]   ;;  %v2453_v14 = vld [vmem:[%s2982_s22 + $0x10] sm:$0xff]   ;;  %482 = vst [vmem:[#allocation4] sm:$0x1] %v2797_v0  ;;  %s3287_s8 = sld [smem:[#allocation21_spill]] (%p1325_p7) }
  0x5a   : > { %2242 = vmatpush3.bf16.msra.mxu0 %v2448_v8  ;;  %v2456_v12 = vld [vmem:[#allocation2] sm:$0xff]   ;;  %v2454_v15 = vld [vmem:[%s2982_s22 + $0x8] sm:$0xff]   ;;  %v2459_v19 = vld [vmem:[#allocation2 + $0x18] sm:$0xff]   ;;  %483 = vst [vmem:[#allocation5] sm:$0x1] %v2797_v0  ;;  %vm2801_vm0 = vmmov (%p1325_p7), 0  }
  0x5b   : > { %2243 = vmatprep.subr.bf16.mxu0 %v2449_v9  ;;  %2257 = vmatprep.mubr.bf16.mxu0 %v2456_v12  ;;  %v2455_v16 = vld [vmem:[%s2982_s22] sm:$0xff]   ;;  %v2458_v18 = vld [vmem:[#allocation2 + $0x10] sm:$0xff]   ;;  %v2475_v59 = vld [vmem:[#allocation6 + $0x18] sm:$0xff]   ;;  %s3288_s21 = sld [smem:[#allocation23_spill]] (%p1325_p7) }
  0x5c   : > { %v2457_v17 = vld [vmem:[#allocation2 + $0x8] sm:$0xff]   ;;  %v2460_v20 = vld [vmem:[#allocation2 + $0x20] sm:$0xff]   ;;  %v2462_v22 = vld [vmem:[#allocation2 + $0x30] sm:$0xff]  }
  0x5d   : > { %v2461_v21 = vld [vmem:[#allocation2 + $0x28] sm:$0xff]   ;;  %v2463_v23 = vld [vmem:[#allocation2 + $0x38] sm:$0xff]  }
  0x5e   : > { %2244 = vmatpush3.bf16.msra.mxu0 %v2449_v9  ;;  %v2472_v24 = vld [vmem:[#allocation6] sm:$0xff]   ;;  %v2473_v57 = vld [vmem:[#allocation6 + $0x8] sm:$0xff]   ;;  %v2474_v58 = vld [vmem:[#allocation6 + $0x10] sm:$0xff]  }
  0x5f   : > { %2245 = vmatprep.subr.bf16.mxu0 %v2450_v10  ;;  %2289 = vmatprep.mubr.bf16.mxu1 %v2472_v24  ;;  %v2476_v60 = vld [vmem:[#allocation6 + $0x20] sm:$0xff]   ;;  %v2477_v61 = vld [vmem:[#allocation6 + $0x28] sm:$0xff]   ;;  %v2478_v62 = vld [vmem:[#allocation6 + $0x30] sm:$0xff]  }
  0x60   : > { %v2479_v63 = vld [vmem:[#allocation6 + $0x38] sm:$0xff]  }
  0x62   : > { %2246 = vmatpush3.bf16.msra.mxu0 %v2450_v10 }
  0x63   : > { %2247 = vmatprep.subr.bf16.mxu0 %v2451_v11 }
  0x66   : > { %2248 = vmatpush3.bf16.msra.mxu0 %v2451_v11 }
  0x67   : > { %2249 = vmatprep.subr.bf16.mxu0 %v2452_v13 }
  0x6a   : > { %2250 = vmatpush3.bf16.msra.mxu0 %v2452_v13 }
  0x6b   : > { %2251 = vmatprep.subr.bf16.mxu0 %v2453_v14 }
  0x6e   : > { %2252 = vmatpush3.bf16.msra.mxu0 %v2453_v14 }
  0x6f   : > { %2253 = vmatprep.subr.bf16.mxu0 %v2454_v15 }
  0x72   : > { %2254 = vmatpush3.bf16.msra.mxu0 %v2454_v15 }
  0x73   : > { %2255 = vmatprep.subr.bf16.mxu0 %v2455_v16 }
  0x76   : > { %2256 = vmatpush3.bf16.msra.mxu0 %v2455_v16 }
  0x79   : > { %2258 = vmatmul.mubr.bf16.vlgmr.msra.gmra.mxu0 %v2457_v17 }
  0x7a   : > { %2261 = vmatprep.mubr.bf16.mxu0 %v2458_v18 }
  0x81   : > { %2262 = vmatmul.mubr.bf16.gmra.mxu0 %v2459_v19 }
  0x82   : > { %2265 = vmatprep.mubr.bf16.mxu0 %v2460_v20 }
  0x89   : > { %2266 = vmatmul.mubr.bf16.gmra.mxu0 %v2461_v21 }
  0x8a   : > { %2269 = vmatprep.mubr.bf16.mxu0 %v2462_v22 }
  0x91   : > { %2270 = vmatmul.mubr.bf16.gmra.mxu0 %v2463_v23 }
 0x139   : > { %v2259_v25 = vpop.f32.mrf.mxu0 }
 0x13b   : > { %v646_v26 = vpop.f32.mrf.mxu0 }
 0x13d   : > { %v2260_v27 = vpop.f32.mrf.mxu0 }
 0x13e   : > { %v2028_v28 = vpack.c.bf16 %v2260_v27, %v2259_v25 }
 0x13f   : > { %v649_v29 = vpop.f32.mrf.mxu0 }
 0x140   : > { %2164 = vst [vmem:[#allocation3 + $0x8] sm:$0xff] %v2028_v28   ;;  %v2023_v30 = vpack.c.bf16 %v649_v29, %v646_v26 }
 0x141   : > { %v2263_v31 = vpop.f32.mrf.mxu0 }
 0x142   : > { %2024 = vst [vmem:[#allocation3] sm:$0xff] %v2023_v30  }
 0x143   : > { %v662_v32 = vpop.f32.mrf.mxu0 }
 0x145   : > { %v2264_v33 = vpop.f32.mrf.mxu0 }
 0x146   : > { %v2038_v34 = vpack.c.bf16 %v2264_v33, %v2263_v31 }
 0x147   : > { %v665_v35 = vpop.f32.mrf.mxu0  ;;  %v2470_v55 = vld [vmem:[#allocation3 + $0x8] sm:$0xff]  }
 0x148   : > { %2166 = vst [vmem:[#allocation3 + $0x18] sm:$0xff] %v2038_v34   ;;  %v2033_v36 = vpack.c.bf16 %v665_v35, %v662_v32 }
 0x149   : > { %v2267_v37 = vpop.f32.mrf.mxu0  ;;  %v2471_v56 = vld [vmem:[#allocation3] sm:$0xff]  }
 0x14a   : > { %2165 = vst [vmem:[#allocation3 + $0x10] sm:$0xff] %v2033_v36  }
 0x14b   : > { %v678_v38 = vpop.f32.mrf.mxu0 }
 0x14d   : > { %v2268_v39 = vpop.f32.mrf.mxu0 }
 0x14e   : > { %v2048_v40 = vpack.c.bf16 %v2268_v39, %v2267_v37 }
 0x14f   : > { %v681_v41 = vpop.f32.mrf.mxu0  ;;  %v2468_v53 = vld [vmem:[#allocation3 + $0x18] sm:$0xff]  }
 0x150   : > { %2168 = vst [vmem:[#allocation3 + $0x28] sm:$0xff] %v2048_v40   ;;  %v2043_v42 = vpack.c.bf16 %v681_v41, %v678_v38 }
 0x151   : > { %v2271_v43 = vpop.f32.mrf.mxu0  ;;  %v2469_v54 = vld [vmem:[#allocation3 + $0x10] sm:$0xff]  }
 0x152   : > { %2167 = vst [vmem:[#allocation3 + $0x20] sm:$0xff] %v2043_v42  }
 0x153   : > { %v694_v44 = vpop.f32.mrf.mxu0 }
 0x155   : > { %v2272_v45 = vpop.f32.mrf.mxu0 }
 0x156   : > { %v2058_v46 = vpack.c.bf16 %v2272_v45, %v2271_v43 }
 0x157   : > { %v697_v47 = vpop.f32.mrf.mxu0  ;;  %v2466_v51 = vld [vmem:[#allocation3 + $0x28] sm:$0xff]  }
 0x158   : > { %2170 = vst [vmem:[#allocation3 + $0x38] sm:$0xff] %v2058_v46   ;;  %v2053_v48 = vpack.c.bf16 %v697_v47, %v694_v44 }
 0x159   : > { %v2467_v52 = vld [vmem:[#allocation3 + $0x20] sm:$0xff]  }
 0x15a   : > { %2169 = vst [vmem:[#allocation3 + $0x30] sm:$0xff] %v2053_v48  }
 0x15f   : > { %v2464_v49 = vld [vmem:[#allocation3 + $0x38] sm:$0xff]  }
 0x160   : > { %2273 = vmatprep.subr.bf16.mxu1 %v2464_v49 }
 0x161   : > { %v2465_v50 = vld [vmem:[#allocation3 + $0x30] sm:$0xff]   ;;  %2274 = vmatpush3.bf16.msra.mxu1 %v2464_v49 }
 0x162   : > { %2275 = vmatprep.subr.bf16.mxu1 %v2465_v50 }
 0x165   : > { %2276 = vmatpush3.bf16.msra.mxu1 %v2465_v50 }
 0x166   : > { %2277 = vmatprep.subr.bf16.mxu1 %v2466_v51 }
 0x169   : > { %2278 = vmatpush3.bf16.msra.mxu1 %v2466_v51 }
 0x16a   : > { %2279 = vmatprep.subr.bf16.mxu1 %v2467_v52 }
 0x16d   : > { %2280 = vmatpush3.bf16.msra.mxu1 %v2467_v52 }
 0x16e   : > { %2281 = vmatprep.subr.bf16.mxu1 %v2468_v53 }
 0x171   : > { %2282 = vmatpush3.bf16.msra.mxu1 %v2468_v53 }
 0x172   : > { %2283 = vmatprep.subr.bf16.mxu1 %v2469_v54 }
 0x175   : > { %2284 = vmatpush3.bf16.msra.mxu1 %v2469_v54 }
 0x176   : > { %2285 = vmatprep.subr.bf16.mxu1 %v2470_v55 }
 0x179   : > { %2286 = vmatpush3.bf16.msra.mxu1 %v2470_v55 }
 0x17a   : > { %2287 = vmatprep.subr.bf16.mxu1 %v2471_v56 }
 0x17d   : > { %2288 = vmatpush3.bf16.msra.mxu1 %v2471_v56 }
 0x180   : > { %2290 = vmatmul.mubr.bf16.vlgmr.msra.gmra.mxu1 %v2473_v57 }
 0x181   : > { %2293 = vmatprep.mubr.bf16.mxu1 %v2474_v58 }
 0x188   : > { %2294 = vmatmul.mubr.bf16.gmra.mxu1 %v2475_v59 }
 0x189   : > { %2297 = vmatprep.mubr.bf16.mxu1 %v2476_v60 }
 0x190   : > { %2298 = vmatmul.mubr.bf16.gmra.mxu1 %v2477_v61 }
 0x191   : > { %2301 = vmatprep.mubr.bf16.mxu1 %v2478_v62 }
 0x198   : > { %2302 = vmatmul.mubr.bf16.gmra.mxu1 %v2479_v63 }
 0x240   : > { %v3038_v1 = vpop.f32.mrf.mxu1 }
 0x241   : > { %v1059_v9 = vmul.f32 %v3038_v1, %v3038_v1 }
 0x242   : > { %v3040_v2 = vpop.f32.mrf.mxu1 }
 0x243   : > { %v1057_v5 = vmul.f32 %v3040_v2, %v3040_v2 }
 0x244   : > { %v3042_v3 = vpop.f32.mrf.mxu1 }
 0x245   : > { %v1060_v13 = vmul.f32 %v3042_v3, %v3042_v3 }
 0x246   : > { %v3044_v4 = vpop.f32.mrf.mxu1 }
 0x247   : > { %v1033_v6 = vadd.f32 %v3044_v4, %v3040_v2  ;;  %v1058_v7 = vmul.f32 %v3044_v4, %v3044_v4 }
 0x248   : > { %v3052_v8 = vpop.f32.mrf.mxu1 }
 0x249   : > { %v1034_v10 = vadd.f32 %v3038_v1, %v1033_v6  ;;  %v1073_v11 = vadd.f32 %v1058_v7, %v1057_v5  ;;  %v1063_v25 = vmul.f32 %v3052_v8, %v3052_v8 }
 0x24a   : > { %v3057_v12 = vpop.f32.mrf.mxu1 }
 0x24b   : > { %v1074_v14 = vadd.f32 %v1073_v11, %v1059_v9  ;;  %v1035_v15 = vadd.f32 %v3042_v3, %v1034_v10  ;;  %v1061_v18 = vmul.f32 %v3057_v12, %v3057_v12 }
 0x24c   : > { %v3062_v16 = vpop.f32.mrf.mxu1 }
 0x24d   : > { %v1036_v17 = vadd.f32 %v1035_v15, %v3057_v12  ;;  %v1075_v19 = vadd.f32 %v1074_v14, %v1060_v13  ;;  %v1064_v29 = vmul.f32 %v3062_v16, %v3062_v16  ;;  %v1032_v14 = vld [vmem:[#allocation4] sm:$0x1] }
 0x24e   : > { %v3067_v20 = vpop.f32.mrf.mxu1 }
 0x24f   : > { %v1076_v21 = vadd.f32 %v1075_v19, %v1061_v18  ;;  %v1037_v22 = vadd.f32 %v1036_v17, %v3067_v20  ;;  %v1062_v23 = vmul.f32 %v3067_v20, %v3067_v20  ;;  %v1056_v18 = vld [vmem:[#allocation5] sm:$0x1] }
 0x250   : > { %v3072_v24 = vpop.f32.mrf.mxu1 }
 0x251   : > { %v1038_v26 = vadd.f32 %v3052_v8, %v1037_v22  ;;  %v1077_v27 = vadd.f32 %v1076_v21, %v1062_v23  ;;  %v1067_v41 = vmul.f32 %v3072_v24, %v3072_v24 }
 0x252   : > { %v3077_v28 = vpop.f32.mrf.mxu1 }
 0x253   : > { %v1078_v30 = vadd.f32 %v1077_v27, %v1063_v25  ;;  %v1039_v31 = vadd.f32 %v3062_v16, %v1038_v26  ;;  %v1065_v34 = vmul.f32 %v3077_v28, %v3077_v28 }
 0x254   : > { %v3082_v32 = vpop.f32.mrf.mxu1 }
 0x255   : > { %v1040_v33 = vadd.f32 %v1039_v31, %v3077_v28  ;;  %v1079_v35 = vadd.f32 %v1078_v30, %v1064_v29  ;;  %v1068_v45 = vmul.f32 %v3082_v32, %v3082_v32  ;;  %v1125_v30 = vlaneseq }
 0x256   : > { %v3087_v36 = vpop.f32.mrf.mxu1 }
 0x257   : > { %v1080_v37 = vadd.f32 %v1079_v35, %v1065_v34  ;;  %v1041_v38 = vadd.f32 %v1040_v33, %v3087_v36  ;;  %v1066_v39 = vmul.f32 %v3087_v36, %v3087_v36  ;;  %v1126_v34 = vshrl.u32 %v1125_v30, 7 }
 0x258   : > { %v3092_v40 = vpop.f32.mrf.mxu1 }
 0x259   : > { %v1042_v42 = vadd.f32 %v3072_v24, %v1041_v38  ;;  %v1081_v43 = vadd.f32 %v1080_v37, %v1066_v39  ;;  %v1071_v56 = vmul.f32 %v3092_v40, %v3092_v40  ;;  %v1127_v35 = vsub.s32 0, %v1126_v34 }
 0x25a   : > { %v3097_v44 = vpop.f32.mrf.mxu1 }
 0x25b   : > { %v1082_v46 = vadd.f32 %v1081_v43, %v1067_v41  ;;  %v1043_v47 = vadd.f32 %v3082_v32, %v1042_v42  ;;  %v1069_v50 = vmul.f32 %v3097_v44, %v3097_v44 }
 0x25c   : > { %v3102_v48 = vpop.f32.mrf.mxu1 }
 0x25d   : > { %v1044_v49 = vadd.f32 %v1043_v47, %v3097_v44  ;;  %v1083_v51 = vadd.f32 %v1082_v46, %v1068_v45  ;;  %v1072_v59 = vmul.f32 %v3102_v48, %v3102_v48 }
 0x25e   : > { %v3107_v52 = vpop.f32.mrf.mxu1 }
 0x25f   : > { %v1084_v53 = vadd.f32 %v1083_v51, %v1069_v50  ;;  %v1045_v54 = vadd.f32 %v1044_v49, %v3107_v52  ;;  %v1070_v55 = vmul.f32 %v3107_v52, %v3107_v52 }
 0x261   : > { %v1046_v57 = vadd.f32 %v3092_v40, %v1045_v54  ;;  %v1085_v58 = vadd.f32 %v1084_v53, %v1070_v55 }
 0x263   : > { %v1047_v60 = vadd.f32 %v3102_v48, %v1046_v57  ;;  %v1086_v61 = vadd.f32 %v1085_v58, %v1071_v56 }
 0x265   : > { %v1048_v62 = vrot.slane %v1047_v60, 4  ;;  %v1087_v63 = vadd.f32 %v1086_v61, %v1072_v59 }
 0x267   : > { %v1049_v0 = vadd.f32 %v1048_v62, %v1047_v60  ;;  %v1088_v5 = vrot.slane %v1087_v63, 4 }
 0x269   : > { %v1050_v6 = vrot.slane %v1049_v0, 2  ;;  %v1089_v7 = vadd.f32 %v1088_v5, %v1087_v63 }
 0x26b   : > { %v1051_v9 = vadd.f32 %v1050_v6, %v1049_v0  ;;  %v1090_v10 = vrot.slane %v1089_v7, 2 }
 0x26d   : > { %v1052_v11 = vrot.slane %v1051_v9, 1  ;;  %v1091_v13 = vadd.f32 %v1090_v10, %v1089_v7  ;;  %v1958_v10 = vld [vmem:[%s439_s24] ss:$0 sm:$0xff] }
 0x26f   : > { %v1053_v15 = vadd.f32 %v1052_v11, %v1051_v9  ;;  %v1092_v17 = vrot.slane %v1091_v13, 1 }
 0x271   : > { %v1054_v19 = vadd.f32 %v1053_v15, %v1032_v14  ;;  %v1093_v21 = vadd.f32 %v1092_v17, %v1091_v13 }
 0x273   : > { %1055 = vst [vmem:[#allocation4] sm:$0x1] %v1054_v19  ;;  %v1094_v22 = vadd.f32 %v1093_v21, %v1056_v18 }
 0x275   : > { %1095 = vst [vmem:[#allocation5] sm:$0x1] %v1094_v22 }
 0x27a   : > { %v1099_v23 = vld [vmem:[#allocation4] sm:$0x1] }
 0x27b   : > { %v1100_v25 = vmul.f32 0.0625, %v1099_v23 }
 0x27c   : > { %v1101_v26 = vld [vmem:[#allocation5] sm:$0x1] }
 0x27d   : > { %v1102_v27 = vmul.f32 0.0625, %v1101_v26  ;;  %v1103_v29 = vmul.f32 %v1100_v25, %v1100_v25  ;;  %v1128_v37 = vrot.slane %v1100_v25, %v1127_v35 }
 0x27f   : > { %v1104_v31 = vsub.f32 %v1102_v27, %v1103_v29  ;;  %v1130_v38 = vsub.f32 %v3040_v2, %v1128_v37  ;;  %v1131_v39 = vsub.f32 %v3044_v4, %v1128_v37  ;;  %v1132_v41 = vsub.f32 %v3038_v1, %v1128_v37 }
 0x280   : > { %v1133_v42 = vsub.f32 %v3042_v3, %v1128_v37  ;;  %v1134_v43 = vsub.f32 %v3057_v12, %v1128_v37  ;;  %v1135_v46 = vsub.f32 %v3067_v20, %v1128_v37  ;;  %v1136_v47 = vsub.f32 %v3052_v8, %v1128_v37 }
 0x281   : > { %v1105_v33 = vadd.f32 1e-05, %v1104_v31  ;;  %v1137_v49 = vsub.f32 %v3062_v16, %v1128_v37  ;;  %v1138_v50 = vsub.f32 %v3077_v28, %v1128_v37  ;;  %v1139_v2 = vsub.f32 %v3087_v36, %v1128_v37 }
 0x282   : > { %v1140_v4 = vsub.f32 %v3072_v24, %v1128_v37  ;;  %v1141_v1 = vsub.f32 %v3082_v32, %v1128_v37  ;;  %v1142_v3 = vsub.f32 %v3097_v44, %v1128_v37  ;;  %v1143_v12 = vsub.f32 %v3107_v52, %v1128_v37  ;;  %v1957_v24 = vld [vmem:[%s436_s20] ss:$0 sm:$0xff] }
 0x283   : > { %2480 = vrsqrt.f32 %v1105_v33  ;;  %v1144_v20 = vsub.f32 %v3092_v40, %v1128_v37  ;;  %v1145_v53 = vsub.f32 %v3102_v48, %v1128_v37 }
 0x290   : > { %v2481_v45 = vpop.eup %2480 }
 0x291   : > { %v1150_v51 = vrot.slane %v2481_v45, %v1127_v35 }
 0x293   : > { %v1152_v8 = vmul.f32 %v1150_v51, %v1130_v38  ;;  %v1153_v54 = vmul.f32 %v1150_v51, %v1131_v39  ;;  %v1154_v16 = vmul.f32 %v1150_v51, %v1132_v41  ;;  %v1155_v55 = vmul.f32 %v1150_v51, %v1133_v42 }
 0x294   : > { %v1156_v28 = vmul.f32 %v1150_v51, %v1134_v43  ;;  %v1157_v32 = vmul.f32 %v1150_v51, %v1135_v46  ;;  %v1158_v36 = vmul.f32 %v1150_v51, %v1136_v47  ;;  %v1159_v56 = vmul.f32 %v1150_v51, %v1137_v49 }
 0x295   : > { %v1160_v44 = vmul.f32 %v1150_v51, %v1138_v50  ;;  %v1161_v52 = vmul.f32 %v1150_v51, %v1139_v2  ;;  %v1162_v57 = vmul.f32 %v1150_v51, %v1140_v4  ;;  %v1163_v40 = vmul.f32 %v1150_v51, %v1141_v1 }
 0x296   : > { %v1164_v58 = vmul.f32 %v1150_v51, %v1142_v3  ;;  %v1165_v48 = vmul.f32 %v1150_v51, %v1143_v12  ;;  %v1166_v59 = vmul.f32 %v1150_v51, %v1144_v20  ;;  %v1167_v60 = vmul.f32 %v1150_v51, %v1145_v53 }
 0x297   : > { %v1174_v61 = vmul.f32 %v1957_v24, %v1152_v8  ;;  %v1175_v62 = vmul.f32 %v1957_v24, %v1153_v54  ;;  %v1176_v63 = vmul.f32 %v1957_v24, %v1154_v16  ;;  %v1177_v0 = vmul.f32 %v1957_v24, %v1155_v55 }
 0x298   : > { %v1178_v5 = vmul.f32 %v1957_v24, %v1156_v28  ;;  %v1179_v6 = vmul.f32 %v1957_v24, %v1157_v32  ;;  %v1180_v7 = vmul.f32 %v1957_v24, %v1158_v36  ;;  %v1181_v9 = vmul.f32 %v1957_v24, %v1159_v56 }
 0x299   : > { %v1182_v11 = vmul.f32 %v1957_v24, %v1160_v44  ;;  %v1183_v13 = vmul.f32 %v1957_v24, %v1161_v52  ;;  %v1184_v14 = vmul.f32 %v1957_v24, %v1162_v57  ;;  %v1185_v15 = vmul.f32 %v1957_v24, %v1163_v40  ;;  %v2179_v52 = vld [vmem:[%s3287_s8 + $0x10] sm:$0xff] (%p1325_p7)   ;;  %v2101_v57 = vld [vmem:[%s3287_s8] sm:$0xff] (%p1325_p7)   ;;  %v2180_v40 = vld [vmem:[%s3287_s8 + $0x18] sm:$0xff] (%p1325_p7)  }
 0x29a   : > { %v1186_v17 = vmul.f32 %v1957_v24, %v1164_v58  ;;  %v1187_v18 = vmul.f32 %v1957_v24, %v1165_v48  ;;  %v1188_v19 = vmul.f32 %v1957_v24, %v1166_v59  ;;  %v1189_v21 = vmul.f32 %v1957_v24, %v1167_v60 }
 0x29b   : > { %v1197_v22 = vadd.f32 %v1958_v10, %v1174_v61  ;;  %v1198_v23 = vadd.f32 %v1958_v10, %v1175_v62  ;;  %v1199_v25 = vadd.f32 %v1958_v10, %v1176_v63  ;;  %v1200_v26 = vadd.f32 %v1958_v10, %v1177_v0  ;;  %v2178_v62 = vld [vmem:[%s3287_s8 + $0x8] sm:$0xff] (%p1325_p7)  }
 0x29c   : > { %v1201_v27 = vadd.f32 %v1958_v10, %v1178_v5  ;;  %v1202_v29 = vadd.f32 %v1958_v10, %v1179_v6  ;;  %v1203_v30 = vadd.f32 %v1958_v10, %v1180_v7  ;;  %v1204_v31 = vadd.f32 %v1958_v10, %v1181_v9  ;;  %v2182_v7 = vld [vmem:[%s3287_s8 + $0x28] sm:$0xff] (%p1325_p7)  }
 0x29d   : > { %v1205_v33 = vadd.f32 %v1958_v10, %v1182_v11  ;;  %v1206_v34 = vadd.f32 %v1958_v10, %v1183_v13  ;;  %v1207_v35 = vadd.f32 %v1958_v10, %v1184_v14  ;;  %v1208_v37 = vadd.f32 %v1958_v10, %v1185_v15 }
 0x29e   : > { %v1209_v38 = vadd.f32 %v1958_v10, %v1186_v17  ;;  %v1210_v39 = vadd.f32 %v1958_v10, %v1187_v18  ;;  %v1211_v41 = vadd.f32 %v1958_v10, %v1188_v19  ;;  %v1212_v42 = vadd.f32 %v1958_v10, %v1189_v21  ;;  %v2183_v17 = vld [vmem:[%s3287_s8 + $0x30] sm:$0xff] (%p1325_p7)  }
 0x29f   : > { %v1213_v43 = vmax.f32 %v1197_v22, 0.0  ;;  %v1214_v45 = vmax.f32 %v1198_v23, 0.0  ;;  %v1215_v46 = vmax.f32 %v1199_v25, 0.0  ;;  %v1216_v47 = vmax.f32 %v1200_v26, 0.0  ;;  %v2181_v22 = vld [vmem:[%s3287_s8 + $0x20] sm:$0xff] (%p1325_p7)  }
 0x2a0   : > { %v1217_v49 = vmax.f32 %v1201_v27, 0.0  ;;  %v1218_v50 = vmax.f32 %v1202_v29, 0.0  ;;  %v1219_v2 = vmax.f32 %v1203_v30, 0.0  ;;  %v1220_v4 = vmax.f32 %v1204_v31, 0.0  ;;  %v2184_v30 = vld [vmem:[%s3287_s8 + $0x38] sm:$0xff] (%p1325_p7)  }
 0x2a1   : > { %v1221_v1 = vmax.f32 %v1205_v33, 0.0  ;;  %v1222_v51 = vmax.f32 %v1206_v34, 0.0  ;;  %v1223_v3 = vmax.f32 %v1207_v35, 0.0  ;;  %v1224_v12 = vmax.f32 %v1208_v37, 0.0  ;;  %1309 = vst [vmem:[#allocation12] sm:$0xff] %v1213_v43  ;;  %1310 = vst [vmem:[#allocation12 + $0x8] sm:$0xff] %v1214_v45 }
 0x2a2   : > { %1311 = vst [vmem:[#allocation12 + $0x10] sm:$0xff] %v1215_v46  ;;  %1312 = vst [vmem:[#allocation12 + $0x18] sm:$0xff] %v1216_v47  ;;  %v1225_v20 = vmax.f32 %v1209_v38, 0.0  ;;  %v1226_v53 = vmax.f32 %v1210_v39, 0.0  ;;  %v1227_v8 = vmax.f32 %v1211_v41, 0.0  ;;  %v1228_v54 = vmax.f32 %v1212_v42, 0.0 }
 0x2a3   : > { %1313 = vst [vmem:[#allocation12 + $0x20] sm:$0xff] %v1217_v49  ;;  %1314 = vst [vmem:[#allocation12 + $0x28] sm:$0xff] %v1218_v50  ;;  %v2063_v16 = vpack.c.bf16 %v1214_v45, %v1213_v43  ;;  %v2068_v55 = vpack.c.bf16 %v1216_v47, %v1215_v46  ;;  %v2073_v24 = vpack.c.bf16 %v1218_v50, %v1217_v49  ;;  %v2798_v58 = vmov (%p1325_p7), 0   ;;  %v1663_v37 = vld [vmem:[#allocation11 + $0x78] sm:$0xff] (%p1325_p7)  ;;  %v1662_v38 = vld [vmem:[#allocation11 + $0x70] sm:$0xff] (%p1325_p7) }
 0x2a4   : > { %1315 = vst [vmem:[#allocation12 + $0x30] sm:$0xff] %v1219_v2  ;;  %1316 = vst [vmem:[#allocation12 + $0x38] sm:$0xff] %v1220_v4  ;;  %v2078_v28 = vpack.c.bf16 %v1220_v4, %v1219_v2  ;;  %v2083_v32 = vpack.c.bf16 %v1222_v51, %v1221_v1  ;;  %v2088_v36 = vpack.c.bf16 %v1224_v12, %v1223_v3  ;;  %2493 = vset.pattern.permute.xlu1 (%p1325_p7), %v2798_v58  ;;  %v2799_v23 = vmov (%p1325_p7), 1   ;;  %v1661_v39 = vld [vmem:[#allocation11 + $0x68] sm:$0xff] (%p1325_p7)  ;;  %v1660_v41 = vld [vmem:[#allocation11 + $0x60] sm:$0xff] (%p1325_p7) }
 0x2a5   : > { %1317 = vst [vmem:[#allocation12 + $0x40] sm:$0xff] %v1221_v1  ;;  %1318 = vst [vmem:[#allocation12 + $0x48] sm:$0xff] %v1222_v51  ;;  %v2093_v56 = vpack.c.bf16 %v1226_v53, %v1225_v20  ;;  %v2098_v44 = vpack.c.bf16 %v1228_v54, %v1227_v8  ;;  %2482 = vset.pattern.permute.xlu0 (%p1325_p7), %v2798_v58  ;;  %v2110_v48 = vunpack.c.l.bf16 (%p1325_p7), %v2179_v52  ;;  %v2111_v59 = vunpack.c.h.bf16 (%p1325_p7), %v2179_v52  ;;  %v1659_v42 = vld [vmem:[#allocation11 + $0x58] sm:$0xff] (%p1325_p7)  ;;  %v1658_v43 = vld [vmem:[#allocation11 + $0x50] sm:$0xff] (%p1325_p7) }
 0x2a6   : > { %1319 = vst [vmem:[#allocation12 + $0x50] sm:$0xff] %v1223_v3  ;;  %1320 = vst [vmem:[#allocation12 + $0x58] sm:$0xff] %v1224_v12  ;;  %v2102_v60 = vunpack.c.l.bf16 (%p1325_p7), %v2101_v57  ;;  %v2103_v61 = vunpack.c.h.bf16 (%p1325_p7), %v2101_v57  ;;  %v2114_v63 = vunpack.c.l.bf16 (%p1325_p7), %v2180_v40  ;;  %v2115_v0 = vunpack.c.h.bf16 (%p1325_p7), %v2180_v40  ;;  %v1657_v45 = vld [vmem:[#allocation11 + $0x48] sm:$0xff] (%p1325_p7)  ;;  %v1656_v46 = vld [vmem:[#allocation11 + $0x40] sm:$0xff] (%p1325_p7) }
 0x2a7   : > { %1321 = vst [vmem:[#allocation12 + $0x60] sm:$0xff] %v1225_v20  ;;  %1322 = vst [vmem:[#allocation12 + $0x68] sm:$0xff] %v1226_v53  ;;  %v2106_v5 = vunpack.c.l.bf16 (%p1325_p7), %v2178_v62  ;;  %v2107_v6 = vunpack.c.h.bf16 (%p1325_p7), %v2178_v62  ;;  %v2494_v9 = vpack.i.bf16 (%p1325_p7), %v2111_v59, %v2110_v48  ;;  %v2122_v14 = vunpack.c.l.bf16 (%p1325_p7), %v2182_v7  ;;  %v1655_v47 = vld [vmem:[#allocation11 + $0x38] sm:$0xff] (%p1325_p7)  ;;  %v1654_v49 = vld [vmem:[#allocation11 + $0x30] sm:$0xff] (%p1325_p7) }
 0x2a8   : > { %1323 = vst [vmem:[#allocation12 + $0x70] sm:$0xff] %v1227_v8  ;;  %1324 = vst [vmem:[#allocation12 + $0x78] sm:$0xff] %v1228_v54  ;;  %1329 = sbr.rel (!%p1325_p7) target bundleno = 1068 (0x42c), region = 80  ;;  %v2483_v10 = vpack.i.bf16 (%p1325_p7), %v2103_v61, %v2102_v60  ;;  %v2499_v11 = vpack.i.bf16 (%p1325_p7), %v2115_v0, %v2114_v63  ;;  %v2123_v15 = vunpack.c.h.bf16 (%p1325_p7), %v2182_v7  ;;  %v2126_v19 = vunpack.c.l.bf16 (%p1325_p7), %v2183_v17  ;;  %v1653_v50 = vld [vmem:[#allocation11 + $0x28] sm:$0xff] (%p1325_p7)  ;;  %v1652_v2 = vld [vmem:[#allocation11 + $0x20] sm:$0xff] (%p1325_p7) }
 0x2a9   : > { %2064 = vst [vmem:[#allocation2] sm:$0xff] %v2063_v16   ;;  %2171 = vst [vmem:[#allocation2 + $0x8] sm:$0xff] %v2068_v55   ;;  %2495 = vperm.xlu1 (%p1325_p7), %2493, %v2494_v9   ;;  %v2488_v13 = vpack.i.bf16 (%p1325_p7), %v2107_v6, %v2106_v5  ;;  %v2127_v21 = vunpack.c.h.bf16 (%p1325_p7), %v2183_v17  ;;  %v2118_v26 = vunpack.c.l.bf16 (%p1325_p7), %v2181_v22  ;;  %v2119_v27 = vunpack.c.h.bf16 (%p1325_p7), %v2181_v22  ;;  %v1651_v4 = vld [vmem:[#allocation11 + $0x18] sm:$0xff] (%p1325_p7)  ;;  %v1650_v1 = vld [vmem:[#allocation11 + $0x10] sm:$0xff] (%p1325_p7) }
 0x2aa   : > { %2172 = vst [vmem:[#allocation2 + $0x10] sm:$0xff] %v2073_v24   ;;  %2173 = vst [vmem:[#allocation2 + $0x18] sm:$0xff] %v2078_v28   ;;  %2484 = vperm.xlu0 (%p1325_p7), %2482, %v2483_v10   ;;  %v2521_v18 = vpack.i.bf16 (%p1325_p7), %v2123_v15, %v2122_v14  ;;  %v2130_v31 = vunpack.c.l.bf16 (%p1325_p7), %v2184_v30  ;;  %v2131_v33 = vunpack.c.h.bf16 (%p1325_p7), %v2184_v30  ;;  %v2800_v35 = vmov (%p1325_p7), 0.0   ;;  %v1649_v51 = vld [vmem:[#allocation11 + $0x8] sm:$0xff] (%p1325_p7)  ;;  %v1648_v3 = vld [vmem:[#allocation11] sm:$0xff] (%p1325_p7) }
 0x2ab   : > { %2174 = vst [vmem:[#allocation2 + $0x20] sm:$0xff] %v2083_v32   ;;  %2175 = vst [vmem:[#allocation2 + $0x28] sm:$0xff] %v2088_v36   ;;  %v2537_v25 = vpack.i.bf16 (%p1325_p7), %v2127_v21, %v2126_v19  ;;  %v2516_v29 = vpack.i.bf16 (%p1325_p7), %v2119_v27, %v2118_v26  ;;  %2305 = vmatprep.subr.mxu0 (%p1325_p7), %v2800_v35  ;;  %2337 = vmatprep.mubr.msk.f32.mxu0 (%p1325_p7), %vm2801_vm0, %v2800_v35  ;;  %v1334_v36 = vld [vmem:[#allocation12 + $0x20] sm:$0xff] (%p1325_p7)  ;;  %v1335_v52 = vld [vmem:[#allocation12 + $0x28] sm:$0xff] (%p1325_p7) }
 0x2ac   : > { %2176 = vst [vmem:[#allocation2 + $0x30] sm:$0xff] %v2093_v56   ;;  %2177 = vst [vmem:[#allocation2 + $0x38] sm:$0xff] %v2098_v44   ;;  %v2554_v34 = vpack.i.bf16 (%p1325_p7), %v2131_v33, %v2130_v31  ;;  %2306 = vmatpush3.msra.mxu0 (%p1325_p7), %v1663_v37  ;;  %v1330_v57 = vld [vmem:[#allocation12] sm:$0xff] (%p1325_p7)  ;;  %v1331_v40 = vld [vmem:[#allocation12 + $0x8] sm:$0xff] (%p1325_p7) }
 0x2ad   : > { %2500 = vperm.xlu1 %2493, %v2499_v11   ;;  %1346 = vst [vmem:[#allocation13] sm:$0xff] %v2800_v35  ;;  %2307 = vmatprep.subr.mxu0 %v2800_v35  ;;  %v3176_v59 = vld [vmem:[#allocation12 + $0x30] sm:$0xff]  ;;  %v3178_v63 = vld [vmem:[#allocation12 + $0x38] sm:$0xff]  ;;  %v1338_v30 = vld [vmem:[#allocation12 + $0x40] sm:$0xff] }
 0x2ae   : > { %2489 = vperm.xlu0 %2482, %v2488_v13   ;;  %2308 = vmatpush3.msra.mxu0 %v1662_v38  ;;  %v3180_v0 = vld [vmem:[#allocation12 + $0x10] sm:$0xff]  ;;  %v3182_v5 = vld [vmem:[#allocation12 + $0x18] sm:$0xff]  ;;  %v1339_v31 = vld [vmem:[#allocation12 + $0x48] sm:$0xff] }
 0x2af   : > { %2309 = vmatprep.subr.mxu0 %v2800_v35  ;;  %v3188_v21 = vld [vmem:[#allocation12 + $0x50] sm:$0xff]  ;;  %v3190_v22 = vld [vmem:[#allocation12 + $0x58] sm:$0xff] }
 0x2b0   : > { %2310 = vmatpush3.msra.mxu0 %v1661_v39 }
 0x2b1   : > { %2504 = vset.pattern.permute.xlu1 %v2799_v23  ;;  %2311 = vmatprep.subr.mxu0 %v2800_v35 }
 0x2b2   : > { %2522 = vperm.xlu0 %2482, %v2521_v18   ;;  %2506 = vperm.xlu1 %2504, %v2488_v13  }
 0x2b3   : > { %2312 = vmatpush3.msra.mxu0 %v1660_v41 }
 0x2b4   : > { %2313 = vmatprep.subr.mxu0 %v2800_v35 }
 0x2b5   : > { %2314 = vmatpush3.msra.mxu0 %v1659_v42 }
 0x2b6   : > { %2538 = vperm.xlu0 %2482, %v2537_v25   ;;  %2511 = vperm.xlu1 %2504, %v2494_v9  }
 0x2b7   : > { %2315 = vmatprep.subr.mxu0 %v2800_v35 }
 0x2b8   : > { %2316 = vmatpush3.msra.mxu0 %v1658_v43 }
 0x2b9   : > { %2317 = vmatprep.subr.mxu0 %v2800_v35 }
 0x2ba   : > { %2542 = vset.pattern.permute.xlu0 %v2799_v23  ;;  %2515 = vset.pattern.permute.xlu1 %v2798_v58 }
 0x2bb   : > { %2544 = vperm.xlu0 %2542, %v2483_v10   ;;  %2517 = vperm.xlu1 %2515, %v2516_v29  }
 0x2bc   : > { %2318 = vmatpush3.msra.mxu0 %v1657_v45 }
 0x2bd   : > { %2319 = vmatprep.subr.mxu0 %v2800_v35 }
 0x2be   : > { %2320 = vmatpush3.msra.mxu0 %v1656_v46 }
 0x2bf   : > { %2549 = vperm.xlu0 %2542, %v2499_v11   ;;  %2526 = vset.pattern.permute.xlu1 %v2799_v23 }
 0x2c0   : > { %2528 = vperm.xlu1 %2526, %v2516_v29   ;;  %2321 = vmatprep.subr.mxu0 %v2800_v35 }
 0x2c1   : > { %2322 = vmatpush3.msra.mxu0 %v1655_v47 }
 0x2c2   : > { %2323 = vmatprep.subr.mxu0 %v2800_v35 }
 0x2c3   : > { %2560 = vperm.xlu0 %2542, %v2537_v25   ;;  %2324 = vmatpush3.msra.mxu0 %v1654_v49 }
 0x2c4   : > { %2533 = vperm.xlu1 %2526, %v2521_v18   ;;  %2325 = vmatprep.subr.mxu0 %v2800_v35 }
 0x2c5   : > { %2326 = vmatpush3.msra.mxu0 %v1653_v50 }
 0x2c6   : > { %2327 = vmatprep.subr.mxu0 %v2800_v35 }
 0x2c7   : > { %2328 = vmatpush3.msra.mxu0 %v1652_v2 }
 0x2c8   : > { %2553 = vset.pattern.permute.xlu1 %v2798_v58  ;;  %2329 = vmatprep.subr.mxu0 %v2800_v35 }
 0x2c9   : > { %2555 = vperm.xlu1 %2553, %v2554_v34   ;;  %2330 = vmatpush3.msra.mxu0 %v1651_v4 }
 0x2ca   : > { %2331 = vmatprep.subr.mxu0 %v2800_v35 }
 0x2cb   : > { %2332 = vmatpush3.msra.mxu0 %v1650_v1 }
 0x2cc   : > { %2333 = vmatprep.subr.mxu0 %v2800_v35 }
 0x2cd   : > { %2564 = vset.pattern.permute.xlu1 %v2799_v23  ;;  %2334 = vmatpush3.msra.mxu0 %v1649_v51 }
 0x2ce   : > { %2566 = vperm.xlu1 %2564, %v2554_v34   ;;  %2335 = vmatprep.subr.mxu0 %v2800_v35 }
 0x2cf   : > { %2336 = vmatpush3.msra.mxu0 %v1648_v3 }
 0x324   : > { %v2496_v12 = vpop.permute.xlu1 %2495 }
 0x325   : > { %v2485_v20 = vpop.permute.xlu0 %2484  ;;  %v2498_v28 = vunpack.i.h.bf16 %v2496_v12  ;;  %v2497_v32 = vunpack.i.l.bf16 %v2496_v12 }
 0x326   : > { %v2487_v56 = vunpack.i.h.bf16 %v2485_v20  ;;  %v2486_v44 = vunpack.i.l.bf16 %v2485_v20 }
 0x327   : > { %v1463_v7 = vmul.f32 %v2497_v32, %v1334_v36  ;;  %v1464_v9 = vmul.f32 %v2498_v28, %v1335_v52 }
 0x328   : > { %v2501_v53 = vpop.permute.xlu1 %2500  ;;  %v1459_v10 = vmul.f32 %v2486_v44, %v1330_v57  ;;  %v1460_v11 = vmul.f32 %v2487_v56, %v1331_v40 }
 0x329   : > { %v2490_v8 = vpop.permute.xlu0 %2489  ;;  %v2503_v58 = vunpack.i.h.bf16 %v2501_v53  ;;  %v2502_v48 = vunpack.i.l.bf16 %v2501_v53 }
 0x32a   : > { %v2492_v60 = vunpack.i.h.bf16 %v2490_v8  ;;  %v2491_v61 = vunpack.i.l.bf16 %v2490_v8  ;;  %v1475_v27 = vmax.f32 %v1459_v10, %v1463_v7  ;;  %v1476_v29 = vmax.f32 %v1460_v11, %v1464_v9  ;;  %v1344_v11 = vld [vmem:[#allocation12 + $0x70] sm:$0xff] }
 0x32b   : > { %v1465_v15 = vmul.f32 %v2502_v48, %v3176_v59  ;;  %v1466_v17 = vmul.f32 %v2503_v58, %v3178_v63 }
 0x32c   : > { %v1461_v18 = vmul.f32 %v2491_v61, %v3180_v0  ;;  %v1462_v19 = vmul.f32 %v2492_v60, %v3182_v5 }
 0x32d   : > { %v2523_v54 = vpop.permute.xlu0 %2522  ;;  %v3170_v16 = vpop.permute.xlu1 %2506 }
 0x32e   : > { %v2525_v13 = vunpack.i.h.bf16 %v2523_v54  ;;  %v2524_v14 = vunpack.i.l.bf16 %v2523_v54  ;;  %v1477_v39 = vmax.f32 %v1461_v18, %v1465_v15  ;;  %v1478_v41 = vmax.f32 %v1462_v19, %v1466_v17  ;;  %v1342_v54 = vld [vmem:[#allocation12 + $0x60] sm:$0xff] }
 0x32f   : > { %v2509_v50 = vunpack.i.h.bf16 %v3170_v16  ;;  %v2508_v2 = vunpack.i.l.bf16 %v3170_v16 }
 0x330   : > { %v1469_v34 = vmul.f32 %v2524_v14, %v3188_v21  ;;  %v1470_v35 = vmul.f32 %v2525_v13, %v3190_v22  ;;  %v1345_v13 = vld [vmem:[#allocation12 + $0x78] sm:$0xff] }
 0x331   : > { %v3172_v55 = vpop.permute.xlu0 %2538  ;;  %v3174_v24 = vpop.permute.xlu1 %2511 }
 0x332   : > { %v2514_v42 = vunpack.i.h.bf16 %v3174_v24  ;;  %v2513_v43 = vunpack.i.l.bf16 %v3174_v24  ;;  %v2541_v4 = vunpack.i.h.bf16 %v3172_v55  ;;  %v2540_v1 = vunpack.i.l.bf16 %v3172_v55  ;;  %v1343_v24 = vld [vmem:[#allocation12 + $0x68] sm:$0xff] }
 0x333   : > { %v1481_v3 = vmax.f32 %v1477_v39, %v1469_v34  ;;  %v1482_v12 = vmax.f32 %v1478_v41, %v1470_v35 }
 0x334   : > { %v1613_v28 = vmul.f32 %v2513_v43, %v1334_v36  ;;  %v1614_v32 = vmul.f32 %v2514_v42, %v1335_v52  ;;  %v1472_v55 = vmul.f32 %v2541_v4, %v1343_v24 }
 0x336   : > { %v2545_v62 = vpop.permute.xlu0 %2544  ;;  %v2518_v6 = vpop.permute.xlu1 %2517 }
 0x337   : > { %v2520_v23 = vunpack.i.h.bf16 %v2518_v6  ;;  %v2519_v25 = vunpack.i.l.bf16 %v2518_v6  ;;  %v2547_v37 = vunpack.i.h.bf16 %v2545_v62  ;;  %v2546_v38 = vunpack.i.l.bf16 %v2545_v62 }
 0x338   : > { %v1471_v6 = vmul.f32 %v2540_v1, %v1342_v54 }
 0x339   : > { %v1467_v45 = vmul.f32 %v2519_v25, %v1338_v30  ;;  %v1468_v46 = vmul.f32 %v2520_v23, %v1339_v31  ;;  %v1609_v20 = vmul.f32 %v2546_v38, %v1330_v57  ;;  %v1610_v53 = vmul.f32 %v2547_v37, %v1331_v40 }
 0x33a   : > { %v2550_v26 = vpop.permute.xlu0 %2549 }
 0x33b   : > { %v2529_v33 = vpop.permute.xlu1 %2528  ;;  %v2552_v56 = vunpack.i.h.bf16 %v2550_v26  ;;  %v2551_v44 = vunpack.i.l.bf16 %v2550_v26  ;;  %v1479_v58 = vmax.f32 %v1475_v27, %v1467_v45  ;;  %v1480_v48 = vmax.f32 %v1476_v29, %v1468_v46 }
 0x33c   : > { %v2531_v47 = vunpack.i.h.bf16 %v2529_v33  ;;  %v2530_v49 = vunpack.i.l.bf16 %v2529_v33  ;;  %v1625_v7 = vmax.f32 %v1609_v20, %v1613_v28  ;;  %v1626_v9 = vmax.f32 %v1610_v53, %v1614_v32 }
 0x33d   : > { %v1615_v36 = vmul.f32 %v2551_v44, %v3176_v59  ;;  %v1616_v52 = vmul.f32 %v2552_v56, %v3178_v63  ;;  %v1483_v19 = vmax.f32 %v1479_v58, %v1471_v6  ;;  %v1484_v23 = vmax.f32 %v1480_v48, %v1472_v55  ;;  %v1976_v48 = vld [vmem:[%s3288_s21] ss:$0 sm:$0xff] }
 0x33e   : > { %v2561_v8 = vpop.permute.xlu0 %2560  ;;  %v1617_v60 = vmul.f32 %v2530_v49, %v1338_v30  ;;  %v1618_v16 = vmul.f32 %v2531_v47, %v1339_v31  ;;  %v1611_v30 = vmul.f32 %v2508_v2, %v3180_v0  ;;  %v1612_v31 = vmul.f32 %v2509_v50, %v3182_v5 }
 0x33f   : > { %v2534_v51 = vpop.permute.xlu1 %2533  ;;  %v2563_v61 = vunpack.i.h.bf16 %v2561_v8  ;;  %v2562_v62 = vunpack.i.l.bf16 %v2561_v8  ;;  %v1487_v42 = vmax.f32 %v1483_v19, %v1484_v23 }
 0x340   : > { %v2536_v10 = vunpack.i.h.bf16 %v2534_v51  ;;  %v2535_v57 = vunpack.i.l.bf16 %v2534_v51  ;;  %v1629_v17 = vmax.f32 %v1625_v7, %v1617_v60  ;;  %v1630_v18 = vmax.f32 %v1626_v9, %v1618_v16 }
 0x341   : > { %v1621_v25 = vmul.f32 %v2562_v62, %v1342_v54  ;;  %v1622_v26 = vmul.f32 %v2563_v61, %v1343_v24  ;;  %v1627_v37 = vmax.f32 %v1611_v30, %v1615_v36  ;;  %v1628_v38 = vmax.f32 %v1612_v31, %v1616_v52 }
 0x342   : > { %v1619_v33 = vmul.f32 %v2535_v57, %v3188_v21  ;;  %v1620_v59 = vmul.f32 %v2536_v10, %v3190_v22 }
 0x343   : > { %v1633_v43 = vmax.f32 %v1629_v17, %v1621_v25  ;;  %v1634_v45 = vmax.f32 %v1630_v18, %v1622_v26 }
 0x344   : > { %v2556_v40 = vpop.permute.xlu1 %2555  ;;  %v1631_v47 = vmax.f32 %v1627_v37, %v1619_v33  ;;  %v1632_v49 = vmax.f32 %v1628_v38, %v1620_v59 }
 0x345   : > { %v2558_v14 = vunpack.i.h.bf16 %v2556_v40  ;;  %v2557_v15 = vunpack.i.l.bf16 %v2556_v40  ;;  %v1637_v22 = vmax.f32 %v1633_v43, %v1634_v45 }
 0x347   : > { %v1473_v27 = vmul.f32 %v2557_v15, %v1344_v11  ;;  %v1474_v29 = vmul.f32 %v2558_v14, %v1345_v13 }
 0x349   : > { %v2567_v34 = vpop.permute.xlu1 %2566  ;;  %v1485_v63 = vmax.f32 %v1481_v3, %v1473_v27  ;;  %v1486_v35 = vmax.f32 %v1482_v12, %v1474_v29 }
 0x34a   : > { %v2569_v39 = vunpack.i.h.bf16 %v2567_v34  ;;  %v2568_v41 = vunpack.i.l.bf16 %v2567_v34 }
 0x34b   : > { %v1488_v46 = vmax.f32 %v1485_v63, %v1486_v35 }
 0x34c   : > { %v1623_v0 = vmul.f32 %v2568_v41, %v1344_v11  ;;  %v1624_v2 = vmul.f32 %v2569_v39, %v1345_v13 }
 0x34d   : > { %v1489_v5 = vmax.f32 %v1487_v42, %v1488_v46 }
 0x34e   : > { %v1635_v50 = vmax.f32 %v1631_v47, %v1623_v0  ;;  %v1636_v21 = vmax.f32 %v1632_v49, %v1624_v2 }
 0x34f   : > { %v1490_v4 = vrot.slane %v1489_v5, 4 }
 0x350   : > { %v1638_v1 = vmax.f32 %v1635_v50, %v1636_v21 }
 0x351   : > { %v1491_v51 = vmax.f32 %v1489_v5, %v1490_v4 }
 0x352   : > { %v1639_v3 = vmax.f32 %v1637_v22, %v1638_v1 }
 0x353   : > { %v1492_v12 = vrot.slane %v1491_v51, 2 }
 0x354   : > { %v1640_v20 = vrot.slane %v1639_v3, 4 }
 0x355   : > { %v1493_v53 = vmax.f32 %v1491_v51, %v1492_v12 }
 0x356   : > { %v1641_v8 = vmax.f32 %v1639_v3, %v1640_v20 }
 0x357   : > { %v1494_v54 = vrot.slane %v1493_v53, 1 }
 0x358   : > { %v1642_v24 = vrot.slane %v1641_v8, 2 }
 0x359   : > { %v1495_v28 = vmax.f32 %v1493_v53, %v1494_v54 }
 0x35a   : > { %v1643_v32 = vmax.f32 %v1641_v8, %v1642_v24 }
 0x35b   : > { %1496 = vst [vmem:[#allocation13] sm:$0x1] %v1495_v28 }
 0x35c   : > { %v1644_v56 = vrot.slane %v1643_v32, 1 }
 0x35e   : > { %v1645_v44 = vmax.f32 %v1643_v32, %v1644_v56 }
 0x360   : > { %1646 = vst [vmem:[#allocation13 + $0x1] sm:$0x1] %v1645_v44 }
 0x367   : > { %v1647_v58 = vld [vmem:[#allocation13] sm:$0xff] }
 0x368   : > { %2338 = vmatmul.mubr.f32.vlgmr.msra.gmra.mxu0 %v1647_v58 }
 0x428   : > { %v1737_v60 = vpop.f32.mrf.mxu0 }
 0x429   : > { %v1738_v16 = vadd.f32 %v1976_v48, %v1737_v60 }
 0x42a   : > { %v2339_v61 = vpop.f32.mrf.mxu0 }
 0x42b   : > { %1741 = vst [vmem:[#allocation15] sm:$0xff] %v1738_v16 }
 0x42c PF: > { %p2378_p9 = scmp.eq.s32.totalorder %s2891_s19, 2  ;;  %s2802_s24 = smov [#allocation13]  }
 0x42d   : > { %s1762_s6 = sshll.u32 %s2802_s24, 4  ;;  %s1763_s6 = int_to_ptr.vmem [resolvable:$true] %s1762_s6 }
 0x42e   : > { %s2650_s9 = scalar_lea.vmem %s1763_s6, 128  ;;  %p2657_p1 = scmp.lt.s32.totalorder %s1763_s6, %s1763_s6 }
 0x42f   : > { %p2651_p5 = scmp.ne.s32.totalorder %s1763_s6, %s2650_s9  ;;  %p2658_p3 = scmp.lt.s32.totalorder %s2650_s9, %s2650_s9 }
 0x431   : > { %p2652_p11 = pnand %p2651_p5, %p2378_p9  ;;  %p2659_p2 = por %p2658_p3, %p2657_p1 }
 0x433   : > { %p2653_p0 = pneg %p2652_p11 }
 0x435   : > { %p2660_p4 = pnand %p2659_p2, %p2653_p0 }
 0x437   : > { %2663 = shalt.err (!%p2660_p4)
}
 0x438   : > { %s3289_s16 = sld [smem:[#allocation25_spill]]  ;;  %s2803_s5 = smov [#allocation12]  }
 0x439   : > { %s1748_s23 = sshll.u32 %s2803_s5, 4  ;;  %s1749_s23 = int_to_ptr.vmem [resolvable:$true] %s1748_s23 }
 0x43a   : > { %s2674_s28 = scalar_lea.vmem %s1749_s23, 2048  ;;  %p2681_p6 = scmp.lt.s32.totalorder %s1749_s23, %s1749_s23 }
 0x43b   : > { %p2675_p13 = scmp.ne.s32.totalorder %s1749_s23, %s2674_s28  ;;  %p2682_p10 = scmp.lt.s32.totalorder %s2674_s28, %s2674_s28 }
 0x43d   : > { %p2676_p8 = pnand %p2675_p13, %p2378_p9  ;;  %p2683_p7 = por %p2682_p10, %p2681_p6 }
 0x43e   : > { %2353 = dma.vmem_to_hbm [thread:$0]  (%p2378_p9), %s1763_s6, 128, %s3289_s16, [#allocation14]  }
 0x43f   : > { %p2677_p12 = pneg %p2676_p8 }
 0x441   : > { %p2684_p5 = pnand %p2683_p7, %p2677_p12 }
 0x443   : > { %2687 = shalt.err (!%p2684_p5)
}
 0x444   : > { %s2804_s29 = smov 128   ;;  %s2805_s13 = smov 8  }
 0x445   : > { %s3290_s22 = sld [smem:[#allocation24_spill]]  ;;  %s2806_s27 = smov [#allocation15]  }
 0x446   : > { %s1773_s20 = sshll.u32 %s2806_s27, 4  ;;  %s1774_s20 = int_to_ptr.vmem [resolvable:$true] %s1773_s20 }
 0x447   : > { %s2698_s11 = scalar_lea.vmem %s1774_s20, 128  ;;  %p2705_p3 = scmp.lt.s32.totalorder %s1774_s20, %s1774_s20 }
 0x448   : > { %p2699_p11 = scmp.ne.s32.totalorder %s1774_s20, %s2698_s11  ;;  %p2706_p2 = scmp.lt.s32.totalorder %s2698_s11, %s2698_s11 }
 0x44a   : > { %p2700_p0 = pnand %p2699_p11, %p2378_p9  ;;  %p2707_p4 = por %p2706_p2, %p2705_p3 }
 0x44b   : > { %2351 = dma.vmem_to_hbm [thread:$0]  (%p2378_p9), %s1749_s23, 2048, %s3290_s22, [#allocation8], %s2804_s29, %s2804_s29, %s2805_s13  }
 0x44c   : > { %p2701_p1 = pneg %p2700_p0 }
 0x44e   : > { %p2708_p13 = pnand %p2707_p4, %p2701_p1 }
 0x450   : > { %2711 = shalt.err (!%p2708_p13)
}
 0x451   : > { %s3291_s6 = sld [smem:[#allocation26_spill]] }
 0x457   : > { %2355 = dma.vmem_to_hbm [thread:$0]  (%p2378_p9), %s1774_s20, 128, %s3291_s6, [#allocation14]  }
 0x458   : > { %2759 = dma.done.wait (%p2378_p9), [#allocation8], 2048  }
 0x459   : > { %2761 = vsyncadd (%p2378_p9), [#allocation8], 4294965248 }
 0x45a   : > { %2763 = dma.done.wait (%p2378_p9), [#allocation14], 256  }
 0x45b   : > { %2765 = vsyncadd (%p2378_p9), [#allocation14], 4294967040 }
 0x45c PF: > { %s27_s18 = sadd.s32 1, %s2788_s18   ;;  %s3292_s13 = smov %s2772_s14 }
 0x45d   : > { %p24_p8 = scmp.ge.s32.totalorder %s27_s18, 5   ;;  %s3293_s14 = smov %s2776_s15 }
 0x45e   : > { %s3294_s15 = smov %s2972_s7  ;;  %s3295_s16 = smov %s2784_s17 }
 0x45f   : > { %s3296_s17 = smov %s3298_s30  ;;  %26 = sbr.rel (!%p24_p8) target bundleno = 14 (0xe), region = 138 }
 0x464   :  { %1794 = vsyncpa [#allocation7], 1 }
 0x465   :  { %1796 = vsyncpa [#allocation7 + $0x1], 1 }
 0x466   :  { %1797 = vsyncpa [#allocation10], 1 }
 0x467   :  { %1799 = vsyncpa [#allocation10 + $0x1], 1 }
 0x468   :  { %1800 = vsyncpa [#allocation8], 1 }
 0x469   :  { %1802 = vsyncpa [#allocation8 + $0x1], 1 }
 0x46a   :  { %1803 = vsyncpa [#allocation14], 1 }

</bundles_post_ra>
